<compile_context>
chip_gen: v7x
topology: tpu7x:2x2x1
jax: 0.10.0
libtpu: 0.0.40
codegen_flags: <defaults>
</compile_context>

<pallas_src>
import jax
import jax.numpy as jnp
from jax.experimental import pallas as pl
from jax.experimental.pallas import tpu as pltpu


def _round_up(x, m):
    return ((x + m - 1) // m) * m


def make_inv_freq(dim):
    # Identical to the PyTorch __init__ buffer: 1 / 10000**(arange(0,dim,2)/dim)
    return 1.0 / (10000.0 ** (jnp.arange(0, dim, 2, dtype=jnp.float32) / dim))


def _fpe_kernel(offset_ref, inv_freq_ref, out_ref):
    # offset_ref  : SMEM (1,)        int32  -- runtime sequence offset
    # inv_freq_ref: VMEM (1, half)   f32    -- constant block index => resident,
    #                                          DMA'd once, not re-fetched per step
    # out_ref     : VMEM (tile_n, 2*half)   -- current output tile
    tile_n, dim = out_ref.shape
    half = dim // 2

    # First row index of this tile (exact int32), cast to f32 only for the
    # product with inv_freq (matches the torch reference semantics).
    base = pl.program_id(0) * tile_n + offset_ref[0]
    t = (jax.lax.broadcasted_iota(jnp.int32, (tile_n, half), 0) + base).astype(
        jnp.float32
    )

    sinusoid = t * inv_freq_ref[...]  # (tile_n, half), VPU elementwise, f32

    # Store halves directly into static slices: no full-width concat
    # intermediate.  Lane-aligned when half % 128 == 0.
    out_ref[:, :half] = jnp.sin(sinusoid).astype(out_ref.dtype)
    out_ref[:, half:] = jnp.cos(sinusoid).astype(out_ref.dtype)


# Per-output-buffer VMEM budget for the double-buffered writeback.
_TILE_BYTES_BUDGET = 6 * 1024 * 1024
_SMALL_N_CUTOFF = 16


def fixed_positional_embedding(
    x,
    inv_freq,
    seq_dim=1,
    offset=0,
    *,
    out_dtype=jnp.float32,
    small_n_cutoff=_SMALL_N_CUTOFF,
):
    """Pallas equivalent of FixedPositionalEmbedding.forward.

    x        : any array; only x.shape[seq_dim] is used (as in the PyTorch code).
    inv_freq : (dim//2,) float32 buffer.
    offset   : Python int or int32 scalar (runtime SMEM value, no recompile).
    Returns  : (1, n, dim) array of out_dtype, n = x.shape[seq_dim].
    """
    assert inv_freq.ndim == 1, "inv_freq must be 1-D (dim//2,)"
    n = int(x.shape[seq_dim])
    half = int(inv_freq.shape[0])
    dim = 2 * half
    out_dtype = jnp.dtype(out_dtype)
    itemsize = out_dtype.itemsize

    # Tiny n (decode-style): kernel dispatch + pipeline prologue dominate; let
    # XLA fuse the plain expression into the consumer instead.
    if n <= small_n_cutoff:
        t = jnp.arange(n, dtype=jnp.float32) + jnp.asarray(offset, jnp.float32)
        sinusoid = t[:, None] * inv_freq.astype(jnp.float32)[None, :]
        emb = jnp.concatenate([jnp.sin(sinusoid), jnp.cos(sinusoid)], axis=-1)
        return emb.astype(out_dtype)[None]

    # ---- Tiling policy --------------------------------------------------
    # Sublane packing granularity of the output dtype (f32:8, bf16:16, int8:32).
    packing = max(8, 32 // itemsize)
    # VMEM-budget-driven row count.
    rows_budget = (_TILE_BYTES_BUDGET // (dim * itemsize)) // packing * packing
    rows_budget = max(packing, rows_budget)
    tile_n = min(_round_up(n, packing), rows_budget)
    # Guarantee >= 2 grid steps when possible so the "parallel" seq axis can
    # actually split across v7x's 2 TensorCores.
    if pl.cdiv(n, tile_n) == 1 and n > 2 * packing:
        tile_n = min(tile_n, _round_up(pl.cdiv(n, 2), packing))
    grid = (pl.cdiv(n, tile_n),)

    tile_bytes = tile_n * dim * itemsize
    # Double-buffered output + resident inv_freq block + slack; capped well
    # under v7x's 64 MiB physical VMEM.
    vmem_limit = int(
        min(48 * 1024 * 1024, max(16 * 1024 * 1024, 2 * tile_bytes + (2 << 20)))
    )

    inv_freq_2d = inv_freq.reshape(1, half).astype(jnp.float32)
    offset_arr = jnp.asarray(offset, dtype=jnp.int32).reshape(1)

    emb = pl.pallas_call(
        _fpe_kernel,
        out_shape=jax.ShapeDtypeStruct((n, dim), out_dtype),
        grid_spec=pltpu.PrefetchScalarGridSpec(
            num_scalar_prefetch=1,
            grid=grid,
            in_specs=[pl.BlockSpec((1, half), lambda i, off: (0, 0))],
            out_specs=pl.BlockSpec((tile_n, dim), lambda i, off: (i, 0)),
        ),
        compiler_params=pltpu.CompilerParams(
            dimension_semantics=("parallel",),
            vmem_limit_bytes=vmem_limit,
        ),
    )(offset_arr, inv_freq_2d)
    return emb[None]  # 'n d -> () n d'


if __name__ == "__main__":
    key = jax.random.PRNGKey(0)

    def ref_fpe(n, inv_freq, offset):
        t = jnp.arange(n, dtype=jnp.float32) + jnp.float32(offset)
        sinusoid = jnp.einsum("i,j->ij", t, inv_freq)
        return jnp.concatenate([jnp.sin(sinusoid), jnp.cos(sinusoid)], axis=-1)[None]

    # --- Case 1: module-spec tiny shape (batch=2, seq=8, hidden=32) ---------
    # n <= 16 takes the fused plain-JAX fallback path (per perf review).
    batch, seq, hidden = 2, 8, 32
    x_small = jax.random.normal(key, (batch, seq, hidden), dtype=jnp.float32)
    inv_small = make_inv_freq(hidden)
    out_small = jax.block_until_ready(
        fixed_positional_embedding(x_small, inv_small, seq_dim=1, offset=3)
    )
    assert out_small.shape == (1, seq, hidden), out_small.shape
    assert jnp.allclose(out_small, ref_fpe(seq, inv_small, 3), atol=1e-5, rtol=1e-5)

    # --- Case 2: Pallas kernel path (seq=200, dim=256 -> half=128, lane-aligned)
    seq2, dim2 = 200, 256
    x2 = jax.random.normal(key, (1, seq2, dim2), dtype=jnp.float32)
    inv2 = make_inv_freq(dim2)

    out0 = fixed_positional_embedding(x2, inv2, seq_dim=1, offset=0)
    out7 = fixed_positional_embedding(x2, inv2, seq_dim=1, offset=7)  # runtime scalar
    outb = fixed_positional_embedding(
        x2, inv2, seq_dim=1, offset=0, out_dtype=jnp.bfloat16
    )
    out0, out7, outb = jax.block_until_ready((out0, out7, outb))

    ref0 = ref_fpe(seq2, inv2, 0)
    ref7 = ref_fpe(seq2, inv2, 7)

    assert out0.shape == (1, seq2, dim2), out0.shape
    assert out0.dtype == jnp.float32
    assert outb.dtype == jnp.bfloat16
    assert jnp.allclose(out0, ref0, atol=1e-4, rtol=1e-4)
    assert jnp.allclose(out7, ref7, atol=1e-4, rtol=1e-4)
    assert jnp.allclose(outb.astype(jnp.float32), ref0, atol=2e-2, rtol=2e-2)

    print("KERNEL_OK")
</pallas_src>

<mosaic_0001>
module attributes {stable_mosaic.version = 11 : i64} {
  func.func @_fpe_kernel(%arg0: i32, %arg1: memref<1xi32, #tpu.memory_space<smem>>, %arg2: memref<1x128xf32, #tpu.memory_space<vmem>>, %arg3: memref<104x256xf32, #tpu.memory_space<vmem>>) attributes {dimension_semantics = [#tpu.dimension_semantics<parallel>], iteration_bounds = array<i64: 2>, scalar_prefetch = 1 : i64, scratch_operands = 0 : i64, tpu.core_type = #tpu.core_type<tc>, window_params = [{pipeline_mode = #tpu.pipeline_mode<synchronous>, transform_indices = @transform_0, window_bounds = array<i64: 1, 128>}, {transform_indices = @transform_1, window_bounds = array<i64: 104, 256>}]} {
    %c104_i32 = arith.constant 104 : i32
    %0 = arith.muli %arg0, %c104_i32 : i32
    %c0 = arith.constant 0 : index
    %1 = memref.load %arg1[%c0] : memref<1xi32, #tpu.memory_space<smem>>
    %2 = arith.addi %0, %1 : i32
    %3 = tpu.iota {dimensions = array<i32: 0>} : vector<104x128xi32>
    %4 = vector.broadcast %2 : i32 to vector<104x128xi32>
    %5 = arith.addi %3, %4 : vector<104x128xi32>
    %6 = arith.sitofp %5 : vector<104x128xi32> to vector<104x128xf32>
    %c0_0 = arith.constant 0 : index
    %c0_1 = arith.constant 0 : index
    %7 = vector.load %arg2[%c0_0, %c0_1] : memref<1x128xf32, #tpu.memory_space<vmem>>, vector<1x128xf32>
    %8 = vector.broadcast %7 : vector<1x128xf32> to vector<104x128xf32>
    %9 = arith.mulf %6, %8 : vector<104x128xf32>
    %10 = math.sin %9 : vector<104x128xf32>
    %c0_2 = arith.constant 0 : index
    %c0_3 = arith.constant 0 : index
    %11 = vector.load %arg3[%c0_2, %c0_3] : memref<104x256xf32, #tpu.memory_space<vmem>>, vector<104x128xf32>
    tpu.vector_store %arg3[%c0_2, %c0_3], %10 {strides = array<i32>} : memref<104x256xf32, #tpu.memory_space<vmem>>, vector<104x128xf32>,
    %12 = math.cos %9 : vector<104x128xf32>
    %c0_4 = arith.constant 0 : index
    %c128 = arith.constant 128 : index
    %13 = vector.load %arg3[%c0_4, %c128] : memref<104x256xf32, #tpu.memory_space<vmem>>, vector<104x128xf32>
    tpu.vector_store %arg3[%c0_4, %c128], %12 {strides = array<i32>} : memref<104x256xf32, #tpu.memory_space<vmem>>, vector<104x128xf32>,
    return
  }
  func.func @transform_0(%arg0: i32, %arg1: memref<1xi32, #tpu.memory_space<smem>>) -> (i32, i32) {
    %c0_i32 = arith.constant 0 : i32
    %c0_i32_0 = arith.constant 0 : i32
    %c0_i32_1 = arith.constant 0 : i32
    return %c0_i32, %c0_i32_0 : i32, i32
  }
  func.func @transform_1(%arg0: i32, %arg1: memref<1xi32, #tpu.memory_space<smem>>) -> (i32, i32) {
    %c0_i32 = arith.constant 0 : i32
    %c0_i32_0 = arith.constant 0 : i32
    return %arg0, %c0_i32 : i32, i32
  }
}

</mosaic_0001>

<bundles_post_ra>
// kernel: tpu_custom_call.1
= control target key start
LH: loop header
LB: loop body
LE: loop exit
PB: predicated region body
PF: predicated region fallthrough
CT: control target
= control target key end

     0   :  { %s4893_s0 = inlined_call_operand.<no memory space> [shape: s32[1], index: 0, kind: input, shape index: {}]   ;;  %s4894_s1 = inlined_call_operand.vmem [shape: f32[1,128], index: 1, kind: input, shape index: {}]   ;;  %s4895_s2 = inlined_call_operand.hbm [shape: f32[200,256], index: 2, kind: output, shape index: {}]  }
   0x1   :  { %7 = sst [smem:[#allocation3]] %s4893_s0 }
   0x2   :  { %8 = vsyncpa [#allocation5], 0 }
   0x3   :  { %10 = vsyncpa [#allocation5 + $0x1], 0  ;;  %s3321_s11 = smov 0   ;;  %s3323_s12 = smov 0  }
   0x4   :  { %s3325_s13 = smov 0   ;;  %s3327_s14 = smov 0  }
   0x5 LB: > { %s3342_s0 = sadd.s32 4294967295, %s3292_s14   ;;  %s2956_s15 = sadd.s32 4294967294, %s3292_s14   ;;  %s3292_s14 = sphi %s3327_s14, %s5051_s14   ;;  %s3288_s13 = sphi %s3325_s13, %s5050_s13   ;;  %s3284_s12 = sphi %s3323_s12, %s5049_s12   ;;  %s3280_s11 = sphi %s3321_s11, %s5048_s11  }
   0x6   : > { %s3346_s16 = sadd.s32 1, %s3292_s14   ;;  %s44_s17 = sadd.s32 1, %s3288_s13 }
   0x7   : > { %s41_s18 = ssub.s32 %s3292_s14, %s3346_s16  ;;  %p54_p0 = scmp.ne.s32.totalorder %s3288_s13, %s3284_s12 }
   0x8   : > { %p42_p1 = scmp.eq.s32.totalorder %s41_s18, 0  ;;  %p55_p2 = scmp.eq.s32.totalorder %s3342_s0, 1 }
   0x9   : > { %p60_p3 = scmp.ne.s32.totalorder %s3284_s12, %s3280_s11  ;;  %p61_p4 = scmp.eq.s32.totalorder %s2956_s15, 1 }
   0xa   : > { %s3357_s19 = scalar_select %p42_p1, %s3288_s13, %s44_s17  }
   0xb   : > { %p3359_p5 = por %p55_p2, %p54_p0  ;;  %p3363_p6 = por %p61_p4, %p60_p3 }
   0xc   : > { %p2958_p7 = scmp.ge.s32.totalorder %s3292_s14, 1  ;;  %p82_p8 = scmp.lt.s32.totalorder %s3292_s14, 3 }
   0xe   : > { %p83_p9 = pnand %p2958_p7, %p82_p8 }
  0x10   : > { %86 = sbr.rel (%p83_p9) target bundleno = 451 (0x1c3), region = 24 }
  0x17   : > { %v106_v0 = vlaneseq  ;;  %s94_s22 = sand.u32 1, %s3284_s12   ;;  %s104_s23 = sld [smem:[#allocation3]]  ;;  %v3384_v8 = vld [vmem:[%s4894_s1] ss:$0 sm:$0xff]  ;;  %v4926_v55 = vmov 683565275  }
  0x18   : > { %s103_s24 = smul.u32 104, %s3342_s0  ;;  %v4915_v57 = vmov 2475754826   ;;  %v4917_v59 = vmov 2131351028   ;;  %s4832_s6 = scalar_lea.sflag [#allocation5], %s94_s22 }
  0x19   : > { %v3370_v1 = vshrl.u32 %v106_v0, 7  ;;  %v4919_v61 = vmov 2102212464   ;;  %v4910_v63 = vmov 920167782   ;;  %s3688_s28 = smul.u32 208, %s94_s22 }
  0x1a   : > { %s2892_s7 = smul.u32 (%p3359_p5), 13, %s3342_s0 }
  0x1b   : > { %v108_v2 = vadd.s32 8, %v3370_v1  ;;  %v109_v3 = vadd.s32 16, %v3370_v1  ;;  %v110_v12 = vadd.s32 24, %v3370_v1  ;;  %v111_v18 = vadd.s32 32, %v3370_v1  ;;  %s3730_s29 = scalar_lea.vmem [#allocation4], %s3688_s28 }
  0x1c   : > { %v112_v22 = vadd.s32 40, %v3370_v1  ;;  %v113_v30 = vadd.s32 48, %v3370_v1  ;;  %s2893_s8 = ssub.s32 (%p3359_p5), 25, %s2892_s7 }
  0x1d   : > { %s105_s25 = sadd.s32 %s104_s23, %s103_s24  ;;  %p2894_p10 = scmp.lt.s32.totalorder (%p3359_p5), %s2893_s8, 13 }
  0x1e   : > { %v3375_v4 = vstv %s105_s25 }
  0x1f   : > { %v121_v5 = vadd.s32 %v3375_v4, %v3370_v1  ;;  %v122_v6 = vadd.s32 %v3375_v4, %v108_v2  ;;  %v123_v7 = vadd.s32 %v3375_v4, %v109_v3  ;;  %v124_v21 = vadd.s32 %v3375_v4, %v110_v12 }
  0x20   : > { %v3409_v29 = vadd.s32 %v3375_v4, %v111_v18  ;;  %v3413_v34 = vadd.s32 %v3375_v4, %v112_v22  ;;  %v3418_v42 = vadd.s32 %v3375_v4, %v113_v30 }
  0x21   : > { %v134_v9 = vcvt.s32.f32 %v121_v5  ;;  %v135_v10 = vcvt.s32.f32 %v122_v6  ;;  %v136_v11 = vcvt.s32.f32 %v123_v7  ;;  %v137_v33 = vcvt.s32.f32 %v124_v21 }
  0x22   : > { %v138_v41 = vcvt.s32.f32 %v3409_v29  ;;  %v139_v45 = vcvt.s32.f32 %v3413_v34 }
  0x23   : > { %v3388_v13 = vmul.f32 %v3384_v8, %v134_v9  ;;  %v3391_v14 = vmul.f32 %v3384_v8, %v135_v10  ;;  %v3394_v15 = vmul.f32 %v3384_v8, %v136_v11  ;;  %v3421_v44 = vmul.f32 %v3384_v8, %v137_v33 }
  0x24   : > { %v4908_v10 = vmov 1326507024  }
  0x25   : > { %v167_v16 = vand.u32 2147483647, %v3388_v13  ;;  %v170_v17 = vand.u32 2139095040, %v3388_v13  ;;  %v271_v19 = vand.u32 2147483647, %v3391_v14  ;;  %v274_v20 = vand.u32 2139095040, %v3391_v14 }
  0x26   : > { %v378_v27 = vand.u32 2139095040, %v3394_v15  ;;  %v375_v39 = vand.u32 2147483647, %v3394_v15  ;;  %4960 = vst [vmem:[#allocation7_spill] sm:$0xff] %v3421_v44  ;;  %vm169_vm12 = vcmp.lt.s32.totalorder %v3388_v13, 0 }
  0x27   : > { %v171_v23 = vshrl.u32 %v170_v17, 23  ;;  %v174_v24 = vand.u32 8388607, %v167_v16  ;;  %v275_v25 = vshrl.u32 %v274_v20, 23  ;;  %v278_v26 = vand.u32 8388607, %v271_v19 }
  0x28   : > { %v379_v32 = vshrl.u32 %v378_v27, 23  ;;  %v3430_v52 = vand.u32 8388607, %v375_v39  ;;  %vm3528_vm14 = vcmp.le.f32.partialorder %v167_v16, 0.7853982 }
  0x29   : > { %v2960_v28 = vadd.s32 4294967169, %v171_v23  ;;  %v2964_v31 = vadd.s32 4294967169, %v275_v25  ;;  %v175_v35 = vor.u32 8388608, %v174_v24  ;;  %v279_v37 = vor.u32 8388608, %v278_v26 }
  0x2a   : > { %v2968_v40 = vadd.s32 4294967169, %v379_v32 }
  0x2b   : > { %v177_v36 = vadd.s32 1, %v2960_v28  ;;  %v281_v38 = vadd.s32 1, %v2964_v31  ;;  %v3424_v48 = vshll.u32 %v175_v35, 8  ;;  %v3426_v51 = vshll.u32 %v279_v37, 8 }
  0x2c   : > { %v3432_v53 = vadd.s32 1, %v2968_v40 }
  0x2d   : > { %vm178_vm0 = vcmp.gt.s32.totalorder %v177_v36, 0  ;;  %vm282_vm1 = vcmp.gt.s32.totalorder %v281_v38, 0 }
  0x2e   : > { %v179_v43 = vsel %vm178_vm0, %v177_v36, 0  ;;  %v283_v49 = vsel %vm282_vm1, %v281_v38, 0  ;;  %vm386_vm6 = vcmp.gt.s32.totalorder %v3432_v53, 0 }
  0x2f   : > { %v180_v46 = vshrl.u32 %v179_v43, 5  ;;  %v181_v47 = vand.u32 31, %v179_v43  ;;  %v285_v50 = vand.u32 31, %v283_v49  ;;  %v3439_v2 = vshrl.u32 %v283_v49, 5 }
  0x31   : > { %v182_v54 = vsub.s32 32, %v181_v47  ;;  %v184_v56 = vshll.u32 %v4926_v55, %v181_v47  ;;  %v187_v58 = vshll.u32 %v4915_v57, %v181_v47  ;;  %v190_v60 = vshll.u32 %v4917_v59, %v181_v47 }
  0x32   : > { %v193_v62 = vshll.u32 %v4919_v61, %v181_v47  ;;  %v196_v0 = vshll.u32 %v4910_v63, %v181_v47  ;;  %vm199_vm2 = vcmp.lt.s32.totalorder %v180_v46, 1  ;;  %vm200_vm3 = vcmp.lt.s32.totalorder %v180_v46, 2 }
  0x33   : > { %v183_v3 = vshrl.u32 %v4926_v55, %v182_v54  ;;  %v185_v5 = vshrl.u32 %v4915_v57, %v182_v54  ;;  %v188_v6 = vshrl.u32 %v4917_v59, %v182_v54  ;;  %v191_v7 = vshrl.u32 %v4919_v61, %v182_v54 }
  0x34   : > { %v194_v9 = vshrl.u32 %v4910_v63, %v182_v54  ;;  %v197_v11 = vshrl.u32 %v4908_v10, %v182_v54  ;;  %vm202_vm4 = vcmp.lt.s32.totalorder %v180_v46, 4  ;;  %v286_v20 = vsub.s32 32, %v285_v50 }
  0x35   : > { %v186_v12 = vor.u32 %v185_v5, %v184_v56  ;;  %v189_v17 = vor.u32 %v188_v6, %v187_v58  ;;  %v192_v18 = vor.u32 %v191_v7, %v190_v60  ;;  %vm201_vm5 = vcmp.lt.s32.totalorder %v180_v46, 3 }
  0x36   : > { %v195_v21 = vor.u32 %v194_v9, %v193_v62  ;;  %v198_v22 = vor.u32 %v197_v11, %v196_v0  ;;  %v288_v23 = vshll.u32 %v4926_v55, %v285_v50  ;;  %v291_v32 = vshll.u32 %v4915_v57, %v285_v50 }
  0x37   : > { %v203_v24 = vsel %vm199_vm2, %v183_v3, %v186_v12  ;;  %v204_v25 = vsel %vm202_vm4, %v192_v18, 2102212464  ;;  %v207_v26 = vsel %vm199_vm2, %v186_v12, %v189_v17  ;;  %v211_v27 = vsel %vm199_vm2, %v189_v17, %v192_v18 }
  0x38   : > { %v205_v28 = vsel %vm201_vm5, %v189_v17, %v204_v25  ;;  %v208_v30 = vsel %vm202_vm4, %v195_v21, 920167782  ;;  %v212_v31 = vsel %vm202_vm4, %v198_v22, 1326507024  ;;  %v287_v36 = vshrl.u32 %v4926_v55, %v286_v20 }
  0x39   : > { %v209_v33 = vsel %vm201_vm5, %v192_v18, %v208_v30  ;;  %v213_v35 = vsel %vm201_vm5, %v195_v21, %v212_v31  ;;  %v289_v37 = vshrl.u32 %v4915_v57, %v286_v20  ;;  %v206_v38 = vsel %vm200_vm3, %v203_v24, %v205_v28 }
  0x3a   : > { %v210_v40 = vsel %vm200_vm3, %v207_v26, %v209_v33  ;;  %v214_v43 = vsel %vm200_vm3, %v211_v27, %v213_v35  ;;  %v292_v47 = vshrl.u32 %v4917_v59, %v286_v20  ;;  %v294_v0 = vshll.u32 %v4917_v59, %v285_v50 }
  0x3b   : > { %v3460_v49 = vmul.u32.u64.low %v3424_v48, %v214_v43  ;;  %v3461_v54 = vmul.u32.u64.high %v3424_v48, %v214_v43, %v3460_v49  ;;  %v3464_v56 = vmul.u32.u64.low %v3424_v48, %v210_v40  ;;  %v3465_v58 = vmul.u32.u64.high %v3424_v48, %v210_v40, %v3464_v56 }
  0x3c   : > { %v290_v60 = vor.u32 %v289_v37, %v288_v23  ;;  %v293_v62 = vor.u32 %v292_v47, %v291_v32  ;;  %v295_v3 = vshrl.u32 %v4919_v61, %v286_v20  ;;  %v297_v46 = vshll.u32 %v4919_v61, %v285_v50 }
  0x3d   : > { %v298_v5 = vshrl.u32 %v4910_v63, %v286_v20  ;;  %v300_v6 = vshll.u32 %v4910_v63, %v285_v50  ;;  %v301_v7 = vshrl.u32 %v4908_v10, %v286_v20  ;;  %v222_v9 = vmul.u32 %v3424_v48, %v206_v38 }
  0x3e   : > { %v296_v11 = vor.u32 %v295_v3, %v294_v0  ;;  %vm303_vm7 = vcmp.lt.s32.totalorder %v3439_v2, 1  ;;  %vm304_vm8 = vcmp.lt.s32.totalorder %v3439_v2, 2  ;;  %vm224_vm9 = vc.u32 %v3461_v54, %v3464_v56 }
  0x3f   : > { %v225_v12 = vadd.s32 1, %v3465_v58  ;;  %v299_v17 = vor.u32 %v298_v5, %v297_v46  ;;  %vm305_vm10 = vcmp.lt.s32.totalorder %v3439_v2, 3  ;;  %v302_v18 = vor.u32 %v301_v7, %v300_v6 }
  0x40   : > { %vm306_vm11 = vcmp.lt.s32.totalorder %v3439_v2, 4  ;;  %v307_v50 = vsel %vm303_vm7, %v287_v36, %v290_v60  ;;  %v311_v20 = vsel %vm303_vm7, %v290_v60, %v293_v62  ;;  %v315_v23 = vsel %vm303_vm7, %v293_v62, %v296_v11 }
  0x41   : > { %v226_v48 = vsel %vm224_vm9, %v225_v12, %v3465_v58  ;;  %v308_v21 = vsel %vm306_vm11, %v296_v11, 2102212464  ;;  %v312_v22 = vsel %vm306_vm11, %v299_v17, 920167782  ;;  %v316_v27 = vsel %vm306_vm11, %v302_v18, 1326507024 }
  0x42   : > { %v227_v24 = vadd.s32 %v226_v48, %v222_v9  ;;  %v309_v25 = vsel %vm305_vm10, %v293_v62, %v308_v21  ;;  %v313_v26 = vsel %vm305_vm10, %v296_v11, %v312_v22  ;;  %v317_v31 = vsel %vm305_vm10, %v299_v17, %v316_v27 }
  0x43   : > { %v310_v28 = vsel %vm304_vm8, %v307_v50, %v309_v25  ;;  %v314_v30 = vsel %vm304_vm8, %v311_v20, %v313_v26  ;;  %v387_v32 = vsel %vm386_vm6, %v3432_v53, 0  ;;  %v318_v35 = vsel %vm304_vm8, %v315_v23, %v317_v31 }
  0x44   : > { %v228_v33 = vadd.s32 536870912, %v227_v24  ;;  %v3493_v36 = vmul.u32.u64.low %v3426_v51, %v314_v30  ;;  %v3494_v37 = vmul.u32.u64.high %v3426_v51, %v314_v30, %v3493_v36  ;;  %v383_v43 = vor.u32 8388608, %v3430_v52 }
  0x45   : > { %v3498_v38 = vmul.u32.u64.low %v3426_v51, %v318_v35  ;;  %v3499_v40 = vmul.u32.u64.high %v3426_v51, %v318_v35, %v3498_v38  ;;  %v479_v47 = vand.u32 2147483647, %v3421_v44  ;;  %v389_v58 = vand.u32 31, %v387_v32 }
  0x46   : > { %v229_v49 = vshrl.u32 %v228_v33, 30  ;;  %v326_v53 = vmul.u32 %v3426_v51, %v310_v28  ;;  %v3507_v2 = vmul.f32 %v3384_v8, %v138_v41  ;;  %v3512_v60 = vmul.f32 %v3384_v8, %v139_v45 }
  0x47   : > { %v140_v62 = vcvt.s32.f32 %v3418_v42  ;;  %v329_v0 = vadd.s32 1, %v3494_v37  ;;  %v390_v3 = vsub.s32 32, %v389_v58  ;;  %vm328_vm13 = vc.u32 %v3499_v40, %v3493_v36 }
  0x48   : > { %4961 = vst [vmem:[#allocation8_spill] sm:$0xff] %v3507_v2  ;;  %4962 = vst [vmem:[#allocation9_spill] sm:$0xff] %v3512_v60  ;;  %v230_v52 = vshll.u32 %v229_v49, 30  ;;  %v3519_v29 = vshll.u32 %v383_v43, 8  ;;  %v482_v41 = vand.u32 2139095040, %v3421_v44  ;;  %v253_v46 = vsub.s32 4, %v229_v49 }
  0x49   : > { %v3524_v34 = vand.u32 8388607, %v479_v47  ;;  %v330_v5 = vsel %vm328_vm13, %v329_v0, %v3494_v37  ;;  %v388_v6 = vshrl.u32 %v387_v32, 5  ;;  %v392_v9 = vshll.u32 %v4926_v55, %v389_v58 }
  0x4a   : > { %v3532_v51 = vsub.s32 %v227_v24, %v230_v52  ;;  %v331_v7 = vadd.s32 %v330_v5, %v326_v53  ;;  %v393_v11 = vshrl.u32 %v4915_v57, %v390_v3  ;;  %v395_v12 = vshll.u32 %v4915_v57, %v389_v58 }
  0x4b   : > { %v396_v16 = vshrl.u32 %v4917_v59, %v390_v3  ;;  %v398_v18 = vshll.u32 %v4917_v59, %v389_v58  ;;  %v399_v50 = vshrl.u32 %v4919_v61, %v390_v3  ;;  %v223_v20 = vadd.s32 %v3464_v56, %v3461_v54 }
  0x4c   : > { %v233_v17 = vsub.s32 0, %v3532_v51  ;;  %v332_v48 = vadd.s32 536870912, %v331_v7  ;;  %v401_v21 = vshll.u32 %v4919_v61, %v389_v58  ;;  %v483_v22 = vshrl.u32 %v482_v41, 23 }
  0x4d   : > { %v254_v24 = vsel %vm169_vm12, %v253_v46, %v229_v49  ;;  %v402_v25 = vshrl.u32 %v4910_v63, %v390_v3  ;;  %vm410_vm15 = vcmp.lt.s32.totalorder %v388_v6, 4  ;;  %v391_v27 = vshrl.u32 %v4926_v55, %v390_v3 }
  0x4e   : > { %v2961_v23 = vmin.u32 %v233_v17, %v3532_v51  ;;  %v3549_v26 = vshrl.u32 %v332_v48, 30  ;;  %v404_v28 = vshll.u32 %v4910_v63, %v389_v58  ;;  %v405_v54 = vshrl.u32 %v4908_v10, %v390_v3 }
  0x4f   : > { %v394_v30 = vor.u32 %v393_v11, %v392_v9  ;;  %v397_v31 = vor.u32 %v396_v16, %v395_v12  ;;  %v400_v32 = vor.u32 %v399_v50, %v398_v18  ;;  %v403_v35 = vor.u32 %v402_v25, %v401_v21 }
  0x50   : > { %v235_v56 = vclz %v2961_v23  ;;  %v334_v33 = vshll.u32 %v3549_v26, 30  ;;  %vm407_vm0 = vcmp.lt.s32.totalorder %v388_v6, 1  ;;  %vm409_vm1 = vcmp.lt.s32.totalorder %v388_v6, 3 }
  0x51   : > { %v406_v38 = vor.u32 %v405_v54, %v404_v28  ;;  %v412_v43 = vsel %vm410_vm15, %v400_v32, 2102212464  ;;  %v2972_v49 = vadd.s32 4294967169, %v483_v22  ;;  %v3558_v53 = vsel %vm3528_vm14, 0, %v254_v24 }
  0x52   : > { %v2962_v37 = vadd.s32 4294967294, %v235_v56  ;;  %v3560_v58 = vsub.s32 %v331_v7, %v334_v33  ;;  %vm408_vm2 = vcmp.lt.s32.totalorder %v388_v6, 2  ;;  %v416_v52 = vsel %vm410_vm15, %v403_v35, 920167782 }
  0x53   : > { %v411_v0 = vsel %vm407_vm0, %v391_v27, %v394_v30  ;;  %v415_v3 = vsel %vm407_vm0, %v394_v30, %v397_v31  ;;  %v417_v41 = vsel %vm409_vm1, %v400_v32, %v416_v52  ;;  %v413_v9 = vsel %vm409_vm1, %v397_v31, %v412_v43 }
  0x54   : > { %vm2963_vm3 = vcmp.lt.s32.totalorder %v2962_v37, 0  ;;  %v337_v5 = vsub.s32 0, %v3560_v58  ;;  %v419_v11 = vsel %vm407_vm0, %v397_v31, %v400_v32  ;;  %v420_v16 = vsel %vm410_vm15, %v406_v38, 1326507024 }
  0x55   : > { %v238_v46 = vsel %vm2963_vm3, 0, %v2962_v37  ;;  %vm273_vm4 = vcmp.lt.s32.totalorder %v3391_v14, 0  ;;  %v418_v50 = vsel %vm408_vm2, %v415_v3, %v417_v41  ;;  %v421_v48 = vsel %vm409_vm1, %v403_v35, %v420_v16 }
  0x56   : > { %v239_v12 = vsub.s32 32, %v238_v46  ;;  %v240_v7 = vshll.u32 %v3532_v51, %v238_v46  ;;  %v243_v17 = vsub.s32 4294967266, %v238_v46  ;;  %v2965_v18 = vmin.u32 %v337_v5, %v3560_v58 }
  0x57   : > { %v422_v23 = vsel %vm408_vm2, %v419_v11, %v421_v48  ;;  %v489_v24 = vadd.s32 1, %v2972_v49  ;;  %v260_v25 = vadd.s32 3, %v3558_v53  ;;  %v414_v51 = vsel %vm408_vm2, %v411_v0, %v413_v9 }
  0x58   : > { %v241_v21 = vshrl.u32 %v223_v20, %v239_v12  ;;  %v244_v22 = vadd.s32 127, %v243_v17  ;;  %v339_v27 = vclz %v2965_v18  ;;  %v487_v28 = vor.u32 8388608, %v3524_v34 }
  0x59   : > { %v3580_v30 = vmul.u32.u64.low %v3519_v29, %v422_v23  ;;  %v3581_v31 = vmul.u32.u64.high %v3519_v29, %v422_v23, %v3580_v30  ;;  %v3584_v20 = vmul.u32.u64.low %v3519_v29, %v418_v50  ;;  %v3585_v33 = vmul.u32.u64.high %v3519_v29, %v418_v50, %v3584_v20 }
  0x5a   : > { %v242_v54 = vor.u32 %v241_v21, %v240_v7  ;;  %v245_v56 = vshll.u32 %v244_v22, 23  ;;  %v2966_v32 = vadd.s32 4294967294, %v339_v27  ;;  %vm490_vm5 = vcmp.gt.s32.totalorder %v489_v24, 0 }
  0x5b   : > { %v357_v6 = vsub.s32 4, %v3549_v26  ;;  %v491_v38 = vsel %vm490_vm5, %v489_v24, 0  ;;  %v3589_v43 = vand.u32 3, %v260_v25  ;;  %v327_v49 = vadd.s32 %v3493_v36, %v3499_v40 }
  0x5c   : > { %v246_v35 = vor.u32 4788187, %v245_v56  ;;  %v249_v37 = vcvt.s32.f32 %v242_v54  ;;  %vm2967_vm6 = vcmp.lt.s32.totalorder %v2966_v32, 0  ;;  %v493_v52 = vand.u32 31, %v491_v38 }
  0x5d   : > { %v342_v3 = vsel %vm2967_vm6, 0, %v2966_v32  ;;  %v430_v41 = vmul.u32 %v3519_v29, %v414_v51  ;;  %vm432_vm7 = vc.u32 %v3581_v31, %v3584_v20  ;;  %vm3598_vm8 = vcmp.le.f32.partialorder %v271_v19, 0.7853982 }
  0x5e   : > { %v247_v0 = vand.u32 2147483647, %v246_v35  ;;  %v343_v5 = vsub.s32 32, %v342_v3  ;;  %v344_v9 = vshll.u32 %v3560_v58, %v342_v3  ;;  %v347_v11 = vsub.s32 4294967266, %v342_v3 }
  0x5f   : > { %v433_v36 = vadd.s32 1, %v3585_v33  ;;  %v358_v29 = vsel %vm273_vm4, %v357_v6, %v3549_v26  ;;  %v3607_v12 = vshrl.u32 %v491_v38, 5  ;;  %v494_v7 = vsub.s32 32, %v493_v52 }
  0x60   : > { %v250_v40 = vmul.f32 %v249_v37, %v247_v0  ;;  %v345_v17 = vshrl.u32 %v327_v49, %v343_v5  ;;  %v348_v16 = vadd.s32 127, %v347_v11  ;;  %v496_v18 = vshll.u32 %v4926_v55, %v493_v52 }
  0x61   : > { %v434_v19 = vsel %vm432_vm7, %v433_v36, %v3585_v33  ;;  %v497_v58 = vshrl.u32 %v4915_v57, %v494_v7  ;;  %v499_v21 = vshll.u32 %v4915_v57, %v493_v52  ;;  %v500_v24 = vshrl.u32 %v4917_v59, %v494_v7 }
  0x62   : > { %v251_v50 = vxor.u32 2147483648, %v250_v40  ;;  %v435_v48 = vadd.s32 %v434_v19, %v430_v41  ;;  %v346_v22 = vor.u32 %v345_v17, %v344_v9  ;;  %v349_v23 = vshll.u32 %v348_v16, 23 }
  0x63   : > { %v502_v26 = vshll.u32 %v4917_v59, %v493_v52  ;;  %v503_v51 = vshrl.u32 %v4919_v61, %v494_v7  ;;  %v505_v54 = vshll.u32 %v4919_v61, %v493_v52  ;;  %v498_v33 = vor.u32 %v497_v58, %v496_v18 }
  0x64   : > { %v252_v25 = vsel %vm169_vm12, %v251_v50, %v250_v40  ;;  %v436_v27 = vadd.s32 536870912, %v435_v48  ;;  %v350_v30 = vor.u32 4788187, %v349_v23  ;;  %v353_v32 = vcvt.s32.f32 %v346_v22 }
  0x65   : > { %v255_v56 = vsel %vm3528_vm14, %v3388_v13, %v252_v25  ;;  %v501_v37 = vor.u32 %v500_v24, %v499_v21  ;;  %v506_v6 = vshrl.u32 %v4910_v63, %v494_v7  ;;  %v508_v49 = vshll.u32 %v4910_v63, %v493_v52 }
  0x66   : > { %3176 = vcosq.f32 %v255_v56  ;;  %v3622_v35 = vshrl.u32 %v436_v27, 30  ;;  %v351_v38 = vand.u32 2147483647, %v350_v30  ;;  %v509_v0 = vshrl.u32 %v4908_v10, %v494_v7 }
  0x67   : > { %3178 = vsinq.f32 %v255_v56  ;;  %v3629_v3 = vsel %vm3598_vm8, 0, %v358_v29  ;;  %v507_v41 = vor.u32 %v506_v6, %v505_v54  ;;  %vm511_vm9 = vcmp.lt.s32.totalorder %v3607_v12, 1 }
  0x68   : > { %v438_v45 = vshll.u32 %v3622_v35, 30  ;;  %v354_v5 = vmul.f32 %v353_v32, %v351_v38  ;;  %v495_v9 = vshrl.u32 %v4926_v55, %v494_v7  ;;  %v504_v11 = vor.u32 %v503_v51, %v502_v26 }
  0x69   : > { %v3636_v36 = vshll.u32 %v487_v28, 8  ;;  %vm262_vm10 = vcmp.lt.s32.totalorder %v3589_v43, 2  ;;  %v510_v40 = vor.u32 %v509_v0, %v508_v49  ;;  %vm513_vm11 = vcmp.lt.s32.totalorder %v3607_v12, 3 }
  0x6a   : > { %v3639_v52 = vsub.s32 %v435_v48, %v438_v45  ;;  %vm514_vm12 = vcmp.lt.s32.totalorder %v3607_v12, 4  ;;  %vm259_vm13 = vweird.f32 %v3388_v13  ;;  %v355_v29 = vxor.u32 2147483648, %v354_v5 }
  0x6b   : > { %vm377_vm14 = vcmp.lt.s32.totalorder %v3394_v15, 0  ;;  %vm512_vm15 = vcmp.lt.s32.totalorder %v3607_v12, 2  ;;  %v516_v34 = vsel %vm514_vm12, %v504_v11, 2102212464  ;;  %v519_v28 = vsel %vm511_vm9, %v498_v33, %v501_v37 }
  0x6c   : > { %vm263_vm0 = vcmp.eq.s32.totalorder %v3589_v43, 0  ;;  %v364_v7 = vadd.s32 3, %v3629_v3  ;;  %v441_v17 = vsub.s32 0, %v3639_v52  ;;  %v520_v16 = vsel %vm514_vm12, %v507_v41, 920167782 }
  0x6d   : > { %v356_v19 = vsel %vm273_vm4, %v355_v29, %v354_v5  ;;  %v515_v18 = vsel %vm511_vm9, %v495_v9, %v498_v33  ;;  %v517_v50 = vsel %vm513_vm11, %v501_v37, %v516_v34  ;;  %v521_v48 = vsel %vm513_vm11, %v504_v11, %v520_v16 }
  0x6e   : > { %v359_v58 = vsel %vm3598_vm8, %v3391_v14, %v356_v19  ;;  %vm3668_vm1 = vcmp.le.f32.partialorder %v375_v39, 0.7853982  ;;  %v2969_v22 = vmin.u32 %v441_v17, %v3639_v52  ;;  %v522_v23 = vsel %vm512_vm15, %v519_v28, %v521_v48 }
  0x6f   : > { %v523_v24 = vsel %vm511_vm9, %v501_v37, %v504_v11  ;;  %3180 = vcosq.f32 %v359_v58  ;;  %v524_v26 = vsel %vm514_vm12, %v510_v40, 1326507024  ;;  %vm266_vm2 = vcmp.eq.s32.totalorder %v3589_v43, 2 }
  0x70   : > { %v3680_v46 = vmul.u32.u64.low %v3636_v36, %v522_v23  ;;  %v3681_v25 = vmul.u32.u64.high %v3636_v36, %v522_v23, %v3680_v46  ;;  %v3684_v39 = vpop.eup %3176  ;;  %3182 = vsinq.f32 %v359_v58  ;;  %v443_v27 = vclz %v2969_v22 }
  0x71   : > { %v461_v51 = vsub.s32 4, %v3622_v35  ;;  %v3692_v54 = vpop.eup %3178  ;;  %v4902_v56 = vxor.u32 2147483648, %v3684_v39  ;;  %v365_v30 = vand.u32 3, %v364_v7  ;;  %v431_v32 = vadd.s32 %v3584_v20, %v3581_v31 }
  0x72   : > { %v525_v33 = vsel %vm513_vm11, %v507_v41, %v524_v26  ;;  %v4903_v37 = vxor.u32 2147483648, %v3692_v54  ;;  %v2970_v6 = vadd.s32 4294967294, %v443_v27  ;;  %v518_v38 = vsel %vm512_vm15, %v515_v18, %v517_v50 }
  0x73   : > { %v526_v49 = vsel %vm512_vm15, %v523_v24, %v525_v33  ;;  %v268_v0 = vsel %vm266_vm2, %v4902_v56, %v3692_v54  ;;  %v583_v20 = vand.u32 2147483647, %v3507_v2  ;;  %vm363_vm3 = vweird.f32 %v3391_v14 }
  0x74   : > { %v3708_v45 = vmul.u32.u64.low %v3636_v36, %v526_v49  ;;  %v3709_v31 = vmul.u32.u64.high %v3636_v36, %v526_v49, %v3708_v45  ;;  %v265_v41 = vsel %vm263_vm0, %v3684_v39, %v4903_v37  ;;  %vm2971_vm4 = vcmp.lt.s32.totalorder %v2970_v6, 0 }
  0x75   : > { %v462_v12 = vsel %vm377_vm14, %v461_v51, %v3622_v35  ;;  %v537_v5 = vadd.s32 1, %v3681_v25  ;;  %v269_v9 = vsel %vm262_vm10, %v265_v41, %v268_v0  ;;  %v446_v11 = vsel %vm2971_vm4, 0, %v2970_v6 }
  0x76   : > { %v534_v40 = vmul.u32 %v3636_v36, %v518_v38  ;;  %v586_v29 = vand.u32 2139095040, %v3507_v2  ;;  %v270_v34 = vsel %vm259_vm13, nan, %v269_v9  ;;  %v447_v28 = vsub.s32 32, %v446_v11 }
  0x77   : > { %v448_v7 = vshll.u32 %v3639_v52, %v446_v11  ;;  %v451_v17 = vsub.s32 4294967266, %v446_v11  ;;  %1519 = vst [vmem:[%s3730_s29] sm:$0xff] %v270_v34  ;;  %v3735_v43 = vsel %vm3668_vm1, 0, %v462_v12  ;;  %vm536_vm5 = vc.u32 %v3709_v31, %v3680_v46 }
  0x78   : > { %v587_v35 = vshrl.u32 %v586_v29, 23  ;;  %v590_v36 = vand.u32 8388607, %v583_v20  ;;  %vm366_vm6 = vcmp.lt.s32.totalorder %v365_v30, 2  ;;  %v449_v16 = vshrl.u32 %v431_v32, %v447_v28 }
  0x79   : > { %v452_v19 = vadd.s32 127, %v451_v17  ;;  %v538_v52 = vsel %vm536_vm5, %v537_v5, %v3681_v25  ;;  %v3742_v18 = vpop.eup %3180  ;;  %vm367_vm7 = vcmp.eq.s32.totalorder %v365_v30, 0  ;;  %vm370_vm8 = vcmp.eq.s32.totalorder %v365_v30, 2 }
  0x7a   : > { %v539_v50 = vadd.s32 %v538_v52, %v534_v40  ;;  %v2976_v48 = vadd.s32 4294967169, %v587_v35  ;;  %v3744_v58 = vpop.eup %3182  ;;  %v4900_v22 = vxor.u32 2147483648, %v3742_v18  ;;  %v450_v23 = vor.u32 %v449_v16, %v448_v7 }
  0x7b   : > { %v453_v24 = vshll.u32 %v452_v19, 23  ;;  %v468_v26 = vadd.s32 3, %v3735_v43  ;;  %v4901_v27 = vxor.u32 2147483648, %v3744_v58  ;;  %v591_v32 = vor.u32 8388608, %v590_v36 }
  0x7c   : > { %v540_v51 = vadd.s32 536870912, %v539_v50  ;;  %v593_v33 = vadd.s32 1, %v2976_v48  ;;  %v372_v25 = vsel %vm370_vm8, %v4900_v22, %v3744_v58  ;;  %v457_v38 = vcvt.s32.f32 %v450_v23 }
  0x7d   : > { %v454_v6 = vor.u32 4788187, %v453_v24  ;;  %v690_v49 = vand.u32 2139095040, %v3512_v60  ;;  %v369_v0 = vsel %vm367_vm7, %v3742_v18, %v4901_v27  ;;  %v687_v41 = vand.u32 2147483647, %v3512_v60 }
  0x7e   : > { %v541_v45 = vshrl.u32 %v540_v51, 30  ;;  %vm594_vm9 = vcmp.gt.s32.totalorder %v593_v33, 0  ;;  %v373_v12 = vsel %vm366_vm6, %v369_v0, %v372_v25  ;;  %v3764_v34 = vmul.f32 %v3384_v8, %v140_v62 }
  0x7f   : > { %v455_v5 = vand.u32 2147483647, %v454_v6  ;;  %v595_v9 = vsel %vm594_vm9, %v593_v33, 0  ;;  %v374_v11 = vsel %vm363_vm3, nan, %v373_v12  ;;  %v691_v29 = vshrl.u32 %v690_v49, 23 }
  0x80   : > { %v542_v40 = vshll.u32 %v541_v45, 30  ;;  %4969 = vst [vmem:[#allocation10_spill] sm:$0xff] %v3764_v34  ;;  %1520 = vst [vmem:[%s3730_s29 + $0x10] sm:$0xff] %v374_v11  ;;  %v3767_v7 = vand.u32 3, %v468_v26  ;;  %vm481_vm10 = vcmp.lt.s32.totalorder %v3421_v44, 0  ;;  %v597_v30 = vand.u32 31, %v595_v9 }
  0x81   : > { %v458_v28 = vmul.f32 %v457_v38, %v455_v5  ;;  %v535_v17 = vadd.s32 %v3680_v46, %v3709_v31  ;;  %v3774_v36 = vshll.u32 %v591_v32, 8  ;;  %v3778_v42 = vand.u32 8388607, %v687_v41 }
  0x82   : > { %v3772_v35 = vsub.s32 %v539_v50, %v542_v40  ;;  %v565_v62 = vsub.s32 4, %v541_v45  ;;  %v3780_v16 = vshrl.u32 %v595_v9, 5  ;;  %v598_v19 = vsub.s32 32, %v597_v30 }
  0x83   : > { %v459_v8 = vxor.u32 2147483648, %v458_v28  ;;  %v600_v48 = vshll.u32 %v4926_v55, %v597_v30  ;;  %v603_v23 = vshll.u32 %v4915_v57, %v597_v30  ;;  %v2980_v46 = vadd.s32 4294967169, %v691_v29 }
  0x84   : > { %v545_v52 = vsub.s32 0, %v3772_v35  ;;  %v601_v50 = vshrl.u32 %v4915_v57, %v598_v19  ;;  %v604_v24 = vshrl.u32 %v4917_v59, %v598_v19  ;;  %v606_v26 = vshll.u32 %v4917_v59, %v597_v30 }
  0x85   : > { %v460_v31 = vsel %vm377_vm14, %v459_v8, %v458_v28  ;;  %v607_v33 = vshrl.u32 %v4919_v61, %v598_v19  ;;  %v695_v25 = vor.u32 8388608, %v3778_v42  ;;  %v566_v6 = vsel %vm481_vm10, %v565_v62, %v541_v45 }
  0x86   : > { %v463_v51 = vsel %vm3668_vm1, %v3394_v15, %v460_v31  ;;  %v2973_v32 = vmin.u32 %v545_v52, %v3772_v35  ;;  %v599_v38 = vshrl.u32 %v4926_v55, %v598_v19  ;;  %v609_v49 = vshll.u32 %v4919_v61, %v597_v30 }
  0x87   : > { %3184 = vcosq.f32 %v463_v51  ;;  %vm3802_vm11 = vcmp.le.f32.partialorder %v479_v47, 0.7853982  ;;  %v602_v12 = vor.u32 %v601_v50, %v600_v48  ;;  %v605_v5 = vor.u32 %v604_v24, %v603_v23 }
  0x88   : > { %3186 = vsinq.f32 %v463_v51  ;;  %v547_v0 = vclz %v2973_v32  ;;  %vm474_vm12 = vcmp.eq.s32.totalorder %v3767_v7, 2  ;;  %v608_v9 = vor.u32 %v607_v33, %v606_v26 }
  0x89   : > { %v610_v11 = vshrl.u32 %v4910_v63, %v598_v19  ;;  %v612_v45 = vshll.u32 %v4910_v63, %v597_v30  ;;  %vm615_vm14 = vcmp.lt.s32.totalorder %v3780_v16, 1  ;;  %vm471_vm15 = vcmp.eq.s32.totalorder %v3767_v7, 0 }
  0x8a   : > { %v2974_v40 = vadd.s32 4294967294, %v547_v0  ;;  %v613_v47 = vshrl.u32 %v4908_v10, %v598_v19  ;;  %vm616_vm0 = vcmp.lt.s32.totalorder %v3780_v16, 2  ;;  %vm618_vm1 = vcmp.lt.s32.totalorder %v3780_v16, 4 }
  0x8b   : > { %vm470_vm2 = vcmp.lt.s32.totalorder %v3767_v7, 2  ;;  %v611_v29 = vor.u32 %v610_v11, %v609_v49  ;;  %vm617_vm4 = vcmp.lt.s32.totalorder %v3780_v16, 3  ;;  %v619_v28 = vsel %vm615_vm14, %v599_v38, %v602_v12 }
  0x8c   : > { %v620_v30 = vsel %vm618_vm1, %v608_v9, 2102212464  ;;  %vm467_vm5 = vweird.f32 %v3394_v15  ;;  %vm2975_vm6 = vcmp.lt.s32.totalorder %v2974_v40, 0  ;;  %v614_v8 = vor.u32 %v613_v47, %v612_v45 }
  0x8d   : > { %v621_v62 = vsel %vm617_vm4, %v605_v5, %v620_v30  ;;  %v623_v19 = vsel %vm615_vm14, %v602_v12, %v605_v5  ;;  %v550_v52 = vsel %vm2975_vm6, 0, %v2974_v40  ;;  %v624_v48 = vsel %vm618_vm1, %v611_v29, 920167782 }
  0x8e   : > { %v627_v23 = vsel %vm615_vm14, %v605_v5, %v608_v9  ;;  %v697_v31 = vadd.s32 1, %v2980_v46  ;;  %v551_v50 = vsub.s32 32, %v550_v52  ;;  %v552_v24 = vshll.u32 %v3772_v35, %v550_v52 }
  0x8f   : > { %v555_v26 = vsub.s32 4294967266, %v550_v52  ;;  %v625_v51 = vsel %vm617_vm4, %v608_v9, %v624_v48  ;;  %v622_v32 = vsel %vm616_vm0, %v619_v28, %v621_v62  ;;  %v628_v38 = vsel %vm618_vm1, %v614_v8, 1326507024 }
  0x90   : > { %v626_v33 = vsel %vm616_vm0, %v623_v19, %v625_v51  ;;  %vm698_vm7 = vcmp.gt.s32.totalorder %v697_v31, 0  ;;  %v553_v49 = vshrl.u32 %v535_v17, %v551_v50  ;;  %v629_v46 = vsel %vm617_vm4, %v611_v29, %v628_v38 }
  0x91   : > { %v556_v0 = vadd.s32 127, %v555_v26  ;;  %v699_v35 = vsel %vm698_vm7, %v697_v31, 0  ;;  %v3840_v12 = vpop.eup %3184  ;;  %v3844_v5 = vsel %vm3802_vm11, 0, %v566_v6  ;;  %v630_v9 = vsel %vm616_vm0, %v627_v23, %v629_v46 }
  0x92   : > { %v3849_v11 = vmul.u32.u64.low %v3774_v36, %v626_v33  ;;  %v3850_v45 = vmul.u32.u64.high %v3774_v36, %v626_v33, %v3849_v11  ;;  %v3853_v17 = vpop.eup %3186  ;;  %v4898_v40 = vxor.u32 2147483648, %v3840_v12  ;;  %v554_v47 = vor.u32 %v553_v49, %v552_v24 }
  0x93   : > { %v557_v29 = vshll.u32 %v556_v0, 23  ;;  %v701_v28 = vand.u32 31, %v699_v35  ;;  %v4899_v30 = vxor.u32 2147483648, %v3853_v17  ;;  %v638_v16 = vmul.u32 %v3774_v36, %v622_v32 }
  0x94   : > { %v3858_v6 = vmul.u32.u64.low %v3774_v36, %v630_v9  ;;  %v3859_v8 = vmul.u32.u64.high %v3774_v36, %v630_v9, %v3858_v6  ;;  %v476_v62 = vsel %vm474_vm12, %v4898_v40, %v3853_v17  ;;  %v561_v52 = vcvt.s32.f32 %v554_v47 }
  0x95   : > { %v558_v19 = vor.u32 4788187, %v557_v29  ;;  %v702_v48 = vsub.s32 32, %v701_v28  ;;  %v473_v23 = vsel %vm471_vm15, %v3840_v12, %v4899_v30  ;;  %v641_v31 = vadd.s32 1, %v3850_v45 }
  0x96   : > { %v704_v36 = vshll.u32 %v4926_v55, %v701_v28  ;;  %v707_v50 = vshll.u32 %v4915_v57, %v701_v28  ;;  %v477_v24 = vsel %vm470_vm2, %v473_v23, %v476_v62  ;;  %v572_v51 = vadd.s32 3, %v3844_v5 }
  0x97   : > { %v559_v26 = vand.u32 2147483647, %v558_v19  ;;  %v705_v32 = vshrl.u32 %v4915_v57, %v702_v48  ;;  %v478_v33 = vsel %vm467_vm5, nan, %v477_v24  ;;  %vm640_vm8 = vc.u32 %v3859_v8, %v3849_v11 }
  0x98   : > { %v700_v38 = vshrl.u32 %v699_v35, 5  ;;  %v708_v49 = vshrl.u32 %v4917_v59, %v702_v48  ;;  %1521 = vst [vmem:[%s3730_s29 + $0x20] sm:$0xff] %v478_v33  ;;  %v642_v46 = vsel %vm640_vm8, %v641_v31, %v3850_v45  ;;  %v710_v9 = vshll.u32 %v4917_v59, %v701_v28 }
  0x99   : > { %v562_v0 = vmul.f32 %v561_v52, %v559_v26  ;;  %v706_v7 = vor.u32 %v705_v32, %v704_v36  ;;  %v643_v47 = vadd.s32 %v642_v46, %v638_v16  ;;  %v711_v6 = vshrl.u32 %v4919_v61, %v702_v48 }
  0x9a   : > { %v709_v29 = vor.u32 %v708_v49, %v707_v50  ;;  %v713_v62 = vshll.u32 %v4919_v61, %v701_v28  ;;  %v714_v23 = vshrl.u32 %v4910_v63, %v702_v48  ;;  %v716_v35 = vshll.u32 %v4910_v63, %v701_v28 }
  0x9b   : > { %v563_v19 = vxor.u32 2147483648, %v562_v0  ;;  %v717_v24 = vshrl.u32 %v4908_v10, %v702_v48  ;;  %v644_v33 = vadd.s32 536870912, %v643_v47  ;;  %v703_v52 = vshrl.u32 %v4926_v55, %v702_v48 }
  0x9c   : > { %v712_v45 = vor.u32 %v711_v6, %v710_v9  ;;  %vm719_vm9 = vcmp.lt.s32.totalorder %v700_v38, 1  ;;  %v715_v31 = vor.u32 %v714_v23, %v713_v62  ;;  %vm722_vm12 = vcmp.lt.s32.totalorder %v700_v38, 4 }
  0x9d   : > { %v564_v16 = vsel %vm481_vm10, %v563_v19, %v562_v0  ;;  %v718_v36 = vor.u32 %v717_v24, %v716_v35  ;;  %v645_v26 = vshrl.u32 %v644_v33, 30  ;;  %vm721_vm14 = vcmp.lt.s32.totalorder %v700_v38, 3 }
  0x9e   : > { %v567_v50 = vsel %vm3802_vm11, %v3421_v44, %v564_v16  ;;  %v724_v28 = vsel %vm722_vm12, %v712_v45, 2102212464  ;;  %vm720_vm15 = vcmp.lt.s32.totalorder %v700_v38, 2  ;;  %v727_v32 = vsel %vm719_vm9, %v706_v7, %v709_v29 }
  0x9f   : > { %3188 = vcosq.f32 %v567_v50  ;;  %v728_v48 = vsel %vm722_vm12, %v715_v31, 920167782  ;;  %v646_v49 = vshll.u32 %v645_v26, 30  ;;  %v723_v46 = vsel %vm719_vm9, %v703_v52, %v706_v7 }
  0xa0   : > { %3190 = vsinq.f32 %v567_v50  ;;  %v725_v0 = vsel %vm721_vm14, %v709_v29, %v724_v28  ;;  %v729_v9 = vsel %vm721_vm14, %v712_v45, %v728_v48  ;;  %v731_v6 = vsel %vm719_vm9, %v709_v29, %v712_v45 }
  0xa1   : > { %v732_v21 = vsel %vm722_vm12, %v718_v36, 1326507024  ;;  %v735_v62 = vshll.u32 %v695_v25, 8  ;;  %v3905_v19 = vsub.s32 %v643_v47, %v646_v49  ;;  %v669_v23 = vsub.s32 4, %v645_v26 }
  0xa2   : > { %v730_v35 = vsel %vm720_vm15, %v727_v32, %v729_v9  ;;  %v733_v24 = vsel %vm721_vm14, %v715_v31, %v732_v21  ;;  %v573_v33 = vand.u32 3, %v572_v51  ;;  %v726_v29 = vsel %vm720_vm15, %v723_v46, %v725_v0 }
  0xa3   : > { %v734_v7 = vsel %vm720_vm15, %v731_v6, %v733_v24  ;;  %v3910_v52 = vmul.u32.u64.low %v735_v62, %v730_v35  ;;  %v3911_v16 = vmul.u32.u64.high %v735_v62, %v730_v35, %v3910_v52  ;;  %v649_v50 = vsub.s32 0, %v3905_v19 }
  0xa4   : > { %v3915_v45 = vmul.u32.u64.low %v735_v62, %v734_v7  ;;  %v3916_v42 = vmul.u32.u64.high %v735_v62, %v734_v7, %v3915_v45  ;;  %vm585_vm10 = vcmp.lt.s32.totalorder %v3507_v2, 0  ;;  %v794_v51 = vand.u32 2139095040, %v3764_v34 }
  0xa5   : > { %v2977_v25 = vmin.u32 %v649_v50, %v3905_v19  ;;  %v670_v47 = vsel %vm585_vm10, %v669_v23, %v645_v26  ;;  %v114_v31 = vadd.s32 56, %v3370_v1  ;;  %vm571_vm11 = vweird.f32 %v3421_v44 }
  0xa6   : > { %v742_v36 = vmul.u32 %v735_v62, %v726_v29  ;;  %v745_v38 = vadd.s32 1, %v3911_v16  ;;  %v4904_v28 = vand.u32 2147483647, %v3764_v34  ;;  %vm574_vm0 = vcmp.lt.s32.totalorder %v573_v33, 2 }
  0xa7   : > { %vm575_vm1 = vcmp.eq.s32.totalorder %v573_v33, 0  ;;  %vm3929_vm2 = vcmp.le.f32.partialorder %v583_v20, 0.7853982  ;;  %v651_v26 = vclz %v2977_v25  ;;  %vm578_vm4 = vcmp.eq.s32.totalorder %v573_v33, 2 }
  0xa8   : > { %v3937_v49 = vsel %vm3929_vm2, 0, %v670_v47  ;;  %vm744_vm6 = vc.u32 %v3916_v42, %v3910_v52  ;;  %v795_v46 = vshrl.u32 %v794_v51, 23  ;;  %v639_v20 = vadd.s32 %v3849_v11, %v3859_v8 }
  0xa9   : > { %v3933_v48 = vpop.eup %3188  ;;  %v2978_v6 = vadd.s32 4294967294, %v651_v26  ;;  %v746_v21 = vsel %vm744_vm6, %v745_v38, %v3911_v16  ;;  %v798_v24 = vand.u32 8388607, %v4904_v28  ;;  %v676_v50 = vadd.s32 3, %v3937_v49 }
  0xaa   : > { %v3940_v0 = vpop.eup %3190  ;;  %v4896_v9 = vxor.u32 2147483648, %v3933_v48  ;;  %v747_v23 = vadd.s32 %v746_v21, %v742_v36  ;;  %v2984_v35 = vadd.s32 4294967169, %v795_v46  ;;  %v128_v11 = vadd.s32 %v3375_v4, %v114_v31 }
  0xab   : > { %v4897_v62 = vxor.u32 2147483648, %v3940_v0  ;;  %vm2979_vm7 = vcmp.lt.s32.totalorder %v2978_v6, 0  ;;  %v799_v31 = vor.u32 8388608, %v798_v24  ;;  %vm689_vm9 = vcmp.lt.s32.totalorder %v3512_v60, 0 }
  0xac   : > { %v580_v7 = vsel %vm578_vm4, %v4896_v9, %v3940_v0  ;;  %v654_v16 = vsel %vm2979_vm7, 0, %v2978_v6  ;;  %v748_v29 = vadd.s32 536870912, %v747_v23  ;;  %v801_v45 = vadd.s32 1, %v2984_v35 }
  0xad   : > { %v577_v8 = vsel %vm575_vm1, %v3933_v48, %v4897_v62  ;;  %v655_v47 = vsub.s32 32, %v654_v16  ;;  %v656_v51 = vshll.u32 %v3905_v19, %v654_v16  ;;  %v659_v36 = vsub.s32 4294967266, %v654_v16 }
  0xae   : > { %v581_v25 = vsel %vm574_vm0, %v577_v8, %v580_v7  ;;  %v3962_v26 = vshrl.u32 %v748_v29, 30  ;;  %vm802_vm8 = vcmp.gt.s32.totalorder %v801_v45, 0  ;;  %v141_v6 = vcvt.s32.f32 %v128_v11 }
  0xaf   : > { %v582_v38 = vsel %vm571_vm11, nan, %v581_v25  ;;  %v657_v46 = vshrl.u32 %v639_v20, %v655_v47  ;;  %v660_v21 = vadd.s32 127, %v659_v36  ;;  %v803_v9 = vsel %vm802_vm8, %v801_v45, 0  ;;  %v3976_v20 = vld [vmem:[%s4894_s1] ss:$0 sm:$0xff] }
  0xb0   : > { %1522 = vst [vmem:[%s3730_s29 + $0x30] sm:$0xff] %v582_v38  ;;  %v750_v35 = vshll.u32 %v3962_v26, 30  ;;  %v805_v33 = vand.u32 31, %v803_v9  ;;  %v3966_v62 = vand.u32 3, %v676_v50  ;;  %v743_v19 = vadd.s32 %v3910_v52, %v3916_v42 }
  0xb1   : > { %v658_v7 = vor.u32 %v657_v46, %v656_v51  ;;  %v661_v8 = vshll.u32 %v660_v21, 23  ;;  %v3971_v40 = vshll.u32 %v799_v31, 8  ;;  %v3979_v11 = vmul.f32 %v3976_v20, %v141_v6 }
  0xb2   : > { %v3969_v16 = vsub.s32 %v747_v23, %v750_v35  ;;  %v806_v29 = vsub.s32 32, %v805_v33  ;;  %v808_v45 = vshll.u32 %v4926_v55, %v805_v33  ;;  %v811_v42 = vshll.u32 %v4915_v57, %v805_v33 }
  0xb3   : > { %v662_v25 = vor.u32 4788187, %v661_v8  ;;  %v665_v24 = vcvt.s32.f32 %v658_v7  ;;  %4974 = vst [vmem:[#allocation11_spill] sm:$0xff] %v3979_v11  ;;  %v814_v51 = vshll.u32 %v4917_v59, %v805_v33  ;;  %v773_v31 = vsub.s32 4, %v3962_v26 }
  0xb4   : > { %v753_v50 = vsub.s32 0, %v3969_v16  ;;  %v809_v52 = vshrl.u32 %v4915_v57, %v806_v29  ;;  %v812_v47 = vshrl.u32 %v4917_v59, %v806_v29  ;;  %v815_v36 = vshrl.u32 %v4919_v61, %v806_v29 }
  0xb5   : > { %v663_v23 = vand.u32 2147483647, %v662_v25  ;;  %v804_v46 = vshrl.u32 %v803_v9, 5  ;;  %v817_v21 = vshll.u32 %v4919_v61, %v805_v33  ;;  %v807_v35 = vshrl.u32 %v4926_v55, %v806_v29 }
  0xb6   : > { %v2981_v38 = vmin.u32 %v753_v50, %v3969_v16  ;;  %v818_v7 = vshrl.u32 %v4910_v63, %v806_v29  ;;  %v898_v8 = vand.u32 2139095040, %v3979_v11  ;;  %v810_v30 = vor.u32 %v809_v52, %v808_v45 }
  0xb7   : > { %v666_v6 = vmul.f32 %v665_v24, %v663_v23  ;;  %v813_v22 = vor.u32 %v812_v47, %v811_v42  ;;  %v816_v27 = vor.u32 %v815_v36, %v814_v51  ;;  %v820_v50 = vshll.u32 %v4910_v63, %v805_v33 }
  0xb8   : > { %v755_v25 = vclz %v2981_v38  ;;  %v819_v37 = vor.u32 %v818_v7, %v817_v21  ;;  %v821_v28 = vshrl.u32 %v4908_v10, %v806_v29  ;;  %vm823_vm12 = vcmp.lt.s32.totalorder %v804_v46, 1 }
  0xb9   : > { %v667_v56 = vxor.u32 2147483648, %v666_v6  ;;  %vm824_vm14 = vcmp.lt.s32.totalorder %v804_v46, 2  ;;  %vm825_vm15 = vcmp.lt.s32.totalorder %v804_v46, 3  ;;  %vm826_vm0 = vcmp.lt.s32.totalorder %v804_v46, 4 }
  0xba   : > { %v2982_v9 = vadd.s32 4294967294, %v755_v25  ;;  %v822_v23 = vor.u32 %v821_v28, %v820_v50  ;;  %v827_v38 = vsel %vm823_vm12, %v807_v35, %v810_v30  ;;  %v828_v33 = vsel %vm826_vm0, %v816_v27, 2102212464 }
  0xbb   : > { %v668_v24 = vsel %vm585_vm10, %v667_v56, %v666_v6  ;;  %v831_v29 = vsel %vm823_vm12, %v810_v30, %v813_v22  ;;  %v829_v42 = vsel %vm825_vm15, %v813_v22, %v828_v33  ;;  %v832_v47 = vsel %vm826_vm0, %v819_v37, 920167782 }
  0xbc   : > { %v671_v45 = vsel %vm3929_vm2, %v3507_v2, %v668_v24  ;;  %vm2983_vm1 = vcmp.lt.s32.totalorder %v2982_v9, 0  ;;  %v774_v32 = vsel %vm689_vm9, %v773_v31, %v3962_v26  ;;  %v833_v36 = vsel %vm825_vm15, %v816_v27, %v832_v47 }
  0xbd   : > { %3192 = vcosq.f32 %v671_v45  ;;  %v758_v52 = vsel %vm2983_vm1, 0, %v2982_v9  ;;  %v835_v21 = vsel %vm823_vm12, %v813_v22, %v816_v27  ;;  %v836_v30 = vsel %vm826_vm0, %v822_v23, 1326507024 }
  0xbe   : > { %3194 = vsinq.f32 %v671_v45  ;;  %v759_v56 = vsub.s32 32, %v758_v52  ;;  %v760_v28 = vshll.u32 %v3969_v16, %v758_v52  ;;  %v763_v51 = vsub.s32 4294967266, %v758_v52 }
  0xbf   : > { %v834_v7 = vsel %vm824_vm14, %v831_v29, %v833_v36  ;;  %v837_v25 = vsel %vm825_vm15, %v819_v37, %v836_v30  ;;  %v830_v50 = vsel %vm824_vm14, %v827_v38, %v829_v42  ;;  %vm4029_vm10 = vcmp.le.f32.partialorder %v687_v41, 0.7853982 }
  0xc0   : > { %v761_v6 = vshrl.u32 %v743_v19, %v759_v56  ;;  %v764_v35 = vadd.s32 127, %v763_v51  ;;  %v838_v16 = vsel %vm824_vm14, %v835_v21, %v837_v25  ;;  %v899_v37 = vshrl.u32 %v898_v8, 23 }
  0xc1   : > { %v4019_v9 = vmul.u32.u64.low %v3971_v40, %v834_v7  ;;  %v4020_v24 = vmul.u32.u64.high %v3971_v40, %v834_v7, %v4019_v9  ;;  %v4024_v22 = vmul.u32.u64.low %v3971_v40, %v838_v16  ;;  %v4025_v27 = vmul.u32.u64.high %v3971_v40, %v838_v16, %v4024_v22 }
  0xc2   : > { %v762_v26 = vor.u32 %v761_v6, %v760_v28  ;;  %v765_v31 = vshll.u32 %v764_v35, 23  ;;  %v115_v46 = vadd.s32 64, %v3370_v1  ;;  %v4036_v45 = vsel %vm4029_vm10, 0, %v774_v32 }
  0xc3   : > { %v846_v33 = vmul.u32 %v3971_v40, %v830_v50  ;;  %v849_v29 = vadd.s32 1, %v4020_v24  ;;  %v4907_v52 = vand.u32 2147483647, %v3979_v11  ;;  %v2988_v42 = vadd.s32 4294967169, %v899_v37 }
  0xc4   : > { %v766_v23 = vor.u32 4788187, %v765_v31  ;;  %v769_v38 = vcvt.s32.f32 %v762_v26  ;;  %vm675_vm2 = vweird.f32 %v3507_v2  ;;  %vm679_vm4 = vcmp.eq.s32.totalorder %v3966_v62, 0 }
  0xc5   : > { %vm848_vm6 = vc.u32 %v4025_v27, %v4019_v9  ;;  %vm682_vm7 = vcmp.eq.s32.totalorder %v3966_v62, 2  ;;  %v780_v47 = vadd.s32 3, %v4036_v45  ;;  %v905_v56 = vadd.s32 1, %v2988_v42 }
  0xc6   : > { %v767_v41 = vand.u32 2147483647, %v766_v23  ;;  %v850_v40 = vsel %vm848_vm6, %v849_v29, %v4020_v24  ;;  %v129_v21 = vadd.s32 %v3375_v4, %v115_v46  ;;  %vm678_vm8 = vcmp.lt.s32.totalorder %v3966_v62, 2 }
  0xc7   : > { %v4045_v8 = vpop.eup %3192  ;;  %v851_v36 = vadd.s32 %v850_v40, %v846_v33  ;;  %v902_v6 = vand.u32 8388607, %v4907_v52  ;;  %vm906_vm12 = vcmp.gt.s32.totalorder %v905_v56, 0  ;;  %v4066_v24 = vand.u32 3, %v780_v47 }
  0xc8   : > { %4977 = vst [vmem:[#allocation12_spill] sm:$0xff] %v4045_v8  ;;  %v4050_v28 = vpop.eup %3194  ;;  %v4905_v51 = vxor.u32 2147483648, %v4045_v8  ;;  %v770_v32 = vmul.f32 %v769_v38, %v767_v41  ;;  %v907_v50 = vsel %vm906_vm12, %v905_v56, 0  ;;  %v4069_v31 = vadd.s32 72, %v3370_v1 }
  0xc9   : > { %4978 = vst [vmem:[#allocation13_spill] sm:$0xff] %v4050_v28  ;;  %v4906_v30 = vxor.u32 2147483648, %v4050_v28  ;;  %v852_v25 = vadd.s32 536870912, %v851_v36  ;;  %v909_v26 = vand.u32 31, %v907_v50  ;;  %vm793_vm14 = vcmp.lt.s32.totalorder %v3764_v34, 0 }
  0xca   : > { %v684_v35 = vsel %vm682_vm7, %v4905_v51, %v4050_v28  ;;  %v771_v7 = vxor.u32 2147483648, %v770_v32  ;;  %v142_v23 = vcvt.s32.f32 %v129_v21  ;;  %v903_v33 = vor.u32 8388608, %v902_v6 }
  0xcb   : > { %v681_v16 = vsel %vm679_vm4, %v4045_v8, %v4906_v30  ;;  %v853_v46 = vshrl.u32 %v852_v25, 30  ;;  %v910_v29 = vsub.s32 32, %v909_v26  ;;  %v912_v41 = vshll.u32 %v4926_v55, %v909_v26 }
  0xcc   : > { %v685_v22 = vsel %vm678_vm8, %v681_v16, %v684_v35  ;;  %v772_v37 = vsel %vm689_vm9, %v771_v7, %v770_v32  ;;  %v915_v47 = vshll.u32 %v4915_v57, %v909_v26  ;;  %v908_v40 = vshrl.u32 %v907_v50, 5 }
  0xcd   : > { %v686_v38 = vsel %vm675_vm2, nan, %v685_v22  ;;  %v775_v62 = vsel %vm4029_vm10, %v3512_v60, %v772_v37  ;;  %v854_v42 = vshll.u32 %v853_v46, 30  ;;  %v913_v56 = vshrl.u32 %v4915_v57, %v910_v29 }
  0xce   : > { %1523 = vst [vmem:[%s3730_s29 + $0x40] sm:$0xff] %v686_v38  ;;  %3196 = vcosq.f32 %v775_v62  ;;  %v916_v32 = vshrl.u32 %v4917_v59, %v910_v29  ;;  %vm786_vm9 = vcmp.eq.s32.totalorder %v4066_v24, 2  ;;  %v918_v19 = vshll.u32 %v4917_v59, %v909_v26 }
  0xcf   : > { %3198 = vsinq.f32 %v775_v62  ;;  %v4085_v21 = vsub.s32 %v851_v36, %v854_v42  ;;  %v919_v6 = vshrl.u32 %v4919_v61, %v910_v29  ;;  %v4090_v35 = vmul.f32 %v3976_v20, %v142_v23 }
  0xd0   : > { %vm783_vm15 = vcmp.eq.s32.totalorder %v4066_v24, 0  ;;  %v847_v7 = vadd.s32 %v4019_v9, %v4025_v27  ;;  %v877_v25 = vsub.s32 4, %v853_v46  ;;  %v911_v50 = vshrl.u32 %v4926_v55, %v910_v29 }
  0xd1   : > { %4979 = vst [vmem:[#allocation14_spill] sm:$0xff] %v4090_v35  ;;  %v921_v16 = vshll.u32 %v4919_v61, %v909_v26  ;;  %vm782_vm0 = vcmp.lt.s32.totalorder %v4066_v24, 2  ;;  %v857_v36 = vsub.s32 0, %v4085_v21  ;;  %v914_v22 = vor.u32 %v913_v56, %v912_v41 }
  0xd2   : > { %v917_v37 = vor.u32 %v916_v32, %v915_v47  ;;  %v922_v38 = vshrl.u32 %v4910_v63, %v910_v29  ;;  %vm779_vm1 = vweird.f32 %v3512_v60  ;;  %v920_v23 = vor.u32 %v919_v6, %v918_v19 }
  0xd3   : > { %v924_v62 = vshll.u32 %v4910_v63, %v909_v26  ;;  %v925_v9 = vshrl.u32 %v4908_v10, %v910_v29  ;;  %vm927_vm10 = vcmp.lt.s32.totalorder %v908_v40, 1  ;;  %v2985_v27 = vmin.u32 %v857_v36, %v4085_v21 }
  0xd4   : > { %v923_v42 = vor.u32 %v922_v38, %v921_v16  ;;  %v943_v51 = vshll.u32 %v903_v33, 8  ;;  %v1002_v30 = vand.u32 2139095040, %v4090_v35  ;;  %v878_v41 = vsel %vm793_vm14, %v877_v25, %v853_v46 }
  0xd5   : > { %v926_v47 = vor.u32 %v925_v9, %v924_v62  ;;  %vm929_vm4 = vcmp.lt.s32.totalorder %v908_v40, 3  ;;  %vm930_vm6 = vcmp.lt.s32.totalorder %v908_v40, 4  ;;  %v4980_v56 = vand.u32 2147483647, %v3764_v34 }
  0xd6   : > { %v859_v26 = vclz %v2985_v27  ;;  %vm928_vm8 = vcmp.lt.s32.totalorder %v908_v40, 2  ;;  %v931_v29 = vsel %vm927_vm10, %v911_v50, %v914_v22  ;;  %v935_v33 = vsel %vm927_vm10, %v914_v22, %v917_v37 }
  0xd7   : > { %vm4109_vm7 = vcmp.le.f32.partialorder %v4980_v56, 0.7853982  ;;  %v932_v19 = vsel %vm930_vm6, %v920_v23, 2102212464  ;;  %v936_v6 = vsel %vm930_vm6, %v923_v42, 920167782  ;;  %v939_v16 = vsel %vm927_vm10, %v917_v37, %v920_v23 }
  0xd8   : > { %v940_v46 = vsel %vm930_vm6, %v926_v47, 1326507024  ;;  %v4116_v25 = vpop.eup %3196  ;;  %v2986_v36 = vadd.s32 4294967294, %v859_v26  ;;  %v933_v38 = vsel %vm929_vm4, %v917_v37, %v932_v19  ;;  %v937_v62 = vsel %vm929_vm4, %v920_v23, %v936_v6 }
  0xd9   : > { %4983 = vst [vmem:[#allocation15_spill] sm:$0xff] %v4116_v25  ;;  %v941_v9 = vsel %vm929_vm4, %v923_v42, %v940_v46  ;;  %v4118_v56 = vpop.eup %3198  ;;  %v4912_v27 = vxor.u32 2147483648, %v4116_v25  ;;  %v934_v52 = vsel %vm928_vm8, %v931_v29, %v933_v38  ;;  %v938_v50 = vsel %vm928_vm8, %v935_v33, %v937_v62 }
  0xda   : > { %4984 = vst [vmem:[#allocation16_spill] sm:$0xff] %v4118_v56  ;;  %v942_v22 = vsel %vm928_vm8, %v939_v16, %v941_v9  ;;  %v4913_v10 = vxor.u32 2147483648, %v4118_v56  ;;  %vm2987_vm12 = vcmp.lt.s32.totalorder %v2986_v36, 0  ;;  %v4914_v16 = vand.u32 2147483647, %v4090_v35 }
  0xdb   : > { %v4125_v47 = vmul.u32.u64.low %v943_v51, %v942_v22  ;;  %v4126_v63 = vmul.u32.u64.high %v943_v51, %v942_v22, %v4125_v47  ;;  %v788_v37 = vsel %vm786_vm9, %v4912_v27, %v4118_v56  ;;  %v862_v23 = vsel %vm2987_vm12, 0, %v2986_v36 }
  0xdc   : > { %v4133_v42 = vmul.u32.u64.low %v943_v51, %v938_v50  ;;  %v4134_v26 = vmul.u32.u64.high %v943_v51, %v938_v50, %v4133_v42  ;;  %v785_v40 = vsel %vm783_vm15, %v4116_v25, %v4913_v10  ;;  %v863_v29 = vsub.s32 32, %v862_v23 }
  0xdd   : > { %v864_v33 = vshll.u32 %v4085_v21, %v862_v23  ;;  %v867_v19 = vsub.s32 4294967266, %v862_v23  ;;  %v789_v6 = vsel %vm782_vm0, %v785_v40, %v788_v37  ;;  %v1003_v46 = vshrl.u32 %v1002_v30, 23 }
  0xde   : > { %v130_v36 = vadd.s32 %v3375_v4, %v4069_v31  ;;  %v790_v38 = vsel %vm779_vm1, nan, %v789_v6  ;;  %v865_v62 = vshrl.u32 %v847_v7, %v863_v29  ;;  %v950_v50 = vmul.u32 %v943_v51, %v934_v52 }
  0xdf   : > { %v868_v9 = vadd.s32 127, %v867_v19  ;;  %1524 = vst [vmem:[%s3730_s29 + $0x50] sm:$0xff] %v790_v38  ;;  %v4153_v21 = vsel %vm4109_vm7, 0, %v878_v41  ;;  %vm952_vm9 = vc.u32 %v4126_v63, %v4133_v42  ;;  %v953_v24 = vadd.s32 1, %v4134_v26 }
  0xe0   : > { %v2992_v30 = vadd.s32 4294967169, %v1003_v46  ;;  %v866_v22 = vor.u32 %v865_v62, %v864_v33  ;;  %v884_v52 = vadd.s32 3, %v4153_v21  ;;  %v1006_v41 = vand.u32 8388607, %v4914_v16 }
  0xe1   : > { %v869_v47 = vshll.u32 %v868_v9, 23  ;;  %v954_v31 = vsel %vm952_vm9, %v953_v24, %v4134_v26  ;;  %v143_v40 = vcvt.s32.f32 %v130_v36  ;;  %v4167_v26 = vadd.s32 80, %v3370_v1 }
  0xe2   : > { %v1009_v37 = vadd.s32 1, %v2992_v30  ;;  %v873_v7 = vcvt.s32.f32 %v866_v22  ;;  %v955_v51 = vadd.s32 %v954_v31, %v950_v50  ;;  %v4162_v33 = vand.u32 3, %v884_v52 }
  0xe3   : > { %v870_v23 = vor.u32 4788187, %v869_v47  ;;  %v1007_v9 = vor.u32 8388608, %v1006_v41  ;;  %v4171_v30 = vmul.f32 %v3976_v20, %v143_v40  ;;  %v951_v32 = vadd.s32 %v4133_v42, %v4126_v63 }
  0xe4   : > { %vm1010_vm15 = vcmp.gt.s32.totalorder %v1009_v37, 0  ;;  %v956_v19 = vadd.s32 536870912, %v955_v51  ;;  %vm887_vm10 = vcmp.eq.s32.totalorder %v4162_v33, 0  ;;  %vm897_vm8 = vcmp.lt.s32.totalorder %v3979_v11, 0 }
  0xe5   : > { %v871_v29 = vand.u32 2147483647, %v870_v23  ;;  %v1011_v6 = vsel %vm1010_vm15, %v1009_v37, 0  ;;  %vm4956_vm9 = vweird.f32 %v3764_v34  ;;  %v5013_v13 = vxor.u32 2147483648, %v3744_v58 }
  0xe6   : > { %v1013_v38 = vand.u32 31, %v1011_v6  ;;  %v4164_v62 = vshrl.u32 %v956_v19, 30  ;;  %v4985_v19 = vmov 920167782  }
  0xe7   : > { %v874_v46 = vmul.f32 %v873_v7, %v871_v29  ;;  %v1012_v29 = vshrl.u32 %v1011_v6, 5 }
  0xe8   : > { %v1014_v24 = vsub.s32 32, %v1013_v38  ;;  %v1016_v50 = vshll.u32 %v4926_v55, %v1013_v38  ;;  %v958_v22 = vshll.u32 %v4164_v62, 30  ;;  %v1019_v47 = vshll.u32 %v4915_v57, %v1013_v38 }
  0xe9   : > { %v875_v36 = vxor.u32 2147483648, %v874_v46  ;;  %v1022_v31 = vshll.u32 %v4917_v59, %v1013_v38  ;;  %v1025_v52 = vshll.u32 %v4919_v61, %v1013_v38  ;;  %v1028_v6 = vshll.u32 %v4985_v19, %v1013_v38 }
  0xea   : > { %v1017_v37 = vshrl.u32 %v4915_v57, %v1014_v24  ;;  %v1020_v23 = vshrl.u32 %v4917_v59, %v1014_v24  ;;  %v1023_v7 = vshrl.u32 %v4919_v61, %v1014_v24  ;;  %v4182_v40 = vsub.s32 %v955_v51, %v958_v22 }
  0xeb   : > { %v876_v41 = vsel %vm793_vm14, %v875_v36, %v874_v46  ;;  %v1026_v27 = vshrl.u32 %v4985_v19, %v1014_v24  ;;  %v1015_v16 = vshrl.u32 %v4926_v55, %v1014_v24  ;;  %v1106_v59 = vand.u32 2139095040, %v4171_v30 }
  0xec   : > { %v879_v10 = vsel %vm4109_vm7, %v3764_v34, %v876_v41  ;;  %v1018_v57 = vor.u32 %v1017_v37, %v1016_v50  ;;  %v961_v61 = vsub.s32 0, %v4182_v40  ;;  %v1021_v60 = vor.u32 %v1020_v23, %v1019_v47 }
  0xed   : > { %3200 = vcosq.f32 %v879_v10  ;;  %v1024_v2 = vor.u32 %v1023_v7, %v1022_v31  ;;  %v1027_v51 = vor.u32 %v1026_v27, %v1025_v52  ;;  %v4986_v46 = vmov 1326507024  }
  0xee   : > { %3202 = vsinq.f32 %v879_v10  ;;  %v1029_v36 = vshrl.u32 %v4986_v46, %v1014_v24  ;;  %vm890_vm14 = vcmp.eq.s32.totalorder %v4162_v33, 2  ;;  %v2989_v50 = vmin.u32 %v961_v61, %v4182_v40 }
  0xef   : > { %vm1031_vm0 = vcmp.lt.s32.totalorder %v1012_v29, 1  ;;  %vm1033_vm4 = vcmp.lt.s32.totalorder %v1012_v29, 3  ;;  %vm1034_vm6 = vcmp.lt.s32.totalorder %v1012_v29, 4  ;;  %v1107_v47 = vshrl.u32 %v1106_v59, 23 }
  0xf0   : > { %v1030_v22 = vor.u32 %v1029_v36, %v1028_v6  ;;  %vm886_vm7 = vcmp.lt.s32.totalorder %v4162_v33, 2  ;;  %v963_v10 = vclz %v2989_v50  ;;  %vm1032_vm12 = vcmp.lt.s32.totalorder %v1012_v29, 2 }
  0xf1   : > { %v1035_v27 = vsel %vm1031_vm0, %v1015_v16, %v1018_v57  ;;  %v1047_v38 = vshll.u32 %v1007_v9, 8  ;;  %v1036_v61 = vsel %vm1034_vm6, %v1024_v2, 2102212464  ;;  %v1039_v63 = vsel %vm1031_vm0, %v1018_v57, %v1021_v60 }
  0xf2   : > { %v1040_v42 = vsel %vm1034_vm6, %v1027_v51, 920167782  ;;  %v1043_v24 = vsel %vm1031_vm0, %v1021_v60, %v1024_v2  ;;  %v2990_v59 = vadd.s32 4294967294, %v963_v10  ;;  %v1037_v31 = vsel %vm1033_vm4, %v1021_v60, %v1036_v61 }
  0xf3   : > { %v1041_v37 = vsel %vm1033_vm4, %v1024_v2, %v1040_v42  ;;  %v1044_v23 = vsel %vm1034_vm6, %v1030_v22, 1326507024  ;;  %v1038_v16 = vsel %vm1032_vm12, %v1035_v27, %v1037_v31  ;;  %v2996_v52 = vadd.s32 4294967169, %v1107_v47 }
  0xf4   : > { %v1042_v9 = vsel %vm1032_vm12, %v1039_v63, %v1041_v37  ;;  %v1045_v7 = vsel %vm1033_vm4, %v1027_v51, %v1044_v23  ;;  %vm2991_vm15 = vcmp.lt.s32.totalorder %v2990_v59, 0  ;;  %v981_v60 = vsub.s32 4, %v4164_v62 }
  0xf5   : > { %v1046_v57 = vsel %vm1032_vm12, %v1043_v24, %v1045_v7  ;;  %v4213_v41 = vmul.u32.u64.low %v1047_v38, %v1042_v9  ;;  %v4214_v6 = vmul.u32.u64.high %v1047_v38, %v1042_v9, %v4213_v41  ;;  %v966_v36 = vsel %vm2991_vm15, 0, %v2990_v59 }
  0xf6   : > { %v4218_v2 = vmul.u32.u64.low %v1047_v38, %v1046_v57  ;;  %v4219_v50 = vmul.u32.u64.high %v1047_v38, %v1046_v57, %v4218_v2  ;;  %v967_v10 = vsub.s32 32, %v966_v36  ;;  %v968_v27 = vshll.u32 %v4182_v40, %v966_v36 }
  0xf7   : > { %v4221_v22 = vpop.eup %3200  ;;  %v971_v51 = vsub.s32 4294967266, %v966_v36  ;;  %v131_v29 = vadd.s32 %v3375_v4, %v4167_v26  ;;  %v1054_v63 = vmul.u32 %v1047_v38, %v1038_v16  ;;  %v4925_v42 = vand.u32 2147483647, %v4171_v30 }
  0xf8   : > { %4987 = vst [vmem:[#allocation17_spill] sm:$0xff] %v4221_v22  ;;  %v4226_v47 = vpop.eup %3202  ;;  %v4923_v61 = vxor.u32 2147483648, %v4221_v22  ;;  %v1113_v24 = vadd.s32 1, %v2996_v52  ;;  %v969_v31 = vshrl.u32 %v951_v32, %v967_v10  ;;  %v1057_v23 = vadd.s32 1, %v4214_v6 }
  0xf9   : > { %4988 = vst [vmem:[#allocation18_spill] sm:$0xff] %v4226_v47  ;;  %v4924_v59 = vxor.u32 2147483648, %v4226_v47  ;;  %v972_v37 = vadd.s32 127, %v971_v51  ;;  %v982_v40 = vsel %vm897_vm8, %v981_v60, %v4164_v62  ;;  %vm1056_vm0 = vc.u32 %v4219_v50, %v4213_v41 }
  0xfa   : > { %v892_v26 = vsel %vm890_vm14, %v4923_v61, %v4226_v47  ;;  %vm1114_vm4 = vcmp.gt.s32.totalorder %v1113_v24, 0  ;;  %v970_v38 = vor.u32 %v969_v31, %v968_v27  ;;  %v1058_v9 = vsel %vm1056_vm0, %v1057_v23, %v4214_v6 }
  0xfb   : > { %v889_v32 = vsel %vm887_vm10, %v4221_v22, %v4924_v59  ;;  %v973_v16 = vshll.u32 %v972_v37, 23  ;;  %v4989_v52 = vand.u32 2147483647, %v3979_v11  ;;  %v1059_v57 = vadd.s32 %v1058_v9, %v1054_v63 }
  0xfc   : > { %v893_v7 = vsel %vm886_vm7, %v889_v32, %v892_v26  ;;  %v1115_v36 = vsel %vm1114_vm4, %v1113_v24, 0  ;;  %v977_v10 = vcvt.s32.f32 %v970_v38  ;;  %v1110_v31 = vand.u32 8388607, %v4925_v42 }
  0xfd   : > { %vm4252_vm14 = vcmp.le.f32.partialorder %v4989_v52, 0.7853982  ;;  %v894_v60 = vsel %vm4956_vm9, nan, %v893_v7  ;;  %v974_v2 = vor.u32 4788187, %v973_v16  ;;  %v1060_v33 = vadd.s32 536870912, %v1059_v57 }
  0xfe   : > { %v4260_v27 = vsel %vm4252_vm14, 0, %v982_v40  ;;  %1525 = vst [vmem:[%s3730_s29 + $0x60] sm:$0xff] %v894_v60  ;;  %v1117_v6 = vand.u32 31, %v1115_v36  ;;  %v144_v37 = vcvt.s32.f32 %v131_v29  ;;  %v4266_v63 = vadd.s32 88, %v3370_v1 }
  0xff   : > { %v975_v51 = vand.u32 2147483647, %v974_v2  ;;  %v988_v24 = vadd.s32 3, %v4260_v27  ;;  %v4269_v23 = vshrl.u32 %v1060_v33, 30  ;;  %v1116_v26 = vshrl.u32 %v1115_v36, 5 }
 0x100   : > { %v1118_v32 = vsub.s32 32, %v1117_v6  ;;  %v1120_v40 = vshll.u32 %v4926_v55, %v1117_v6  ;;  %v4992_v16 = vmov 2475754826   ;;  %v4993_v7 = vmov 2131351028  }
 0x101   : > { %v978_v38 = vmul.f32 %v977_v10, %v975_v51  ;;  %v1123_v9 = vshll.u32 %v4992_v16, %v1117_v6  ;;  %v1126_v52 = vshll.u32 %v4993_v7, %v1117_v6  ;;  %v1062_v60 = vshll.u32 %v4269_v23, 30 }
 0x102   : > { %v1121_v29 = vshrl.u32 %v4992_v16, %v1118_v32  ;;  %v4994_v2 = vmov 2102212464   ;;  %v1132_v59 = vshll.u32 %v4985_v19, %v1117_v6  ;;  %v1124_v33 = vshrl.u32 %v4993_v7, %v1118_v32 }
 0x103   : > { %v1129_v61 = vshll.u32 %v4994_v2, %v1117_v6  ;;  %v979_v42 = vxor.u32 2147483648, %v978_v38  ;;  %v1127_v36 = vshrl.u32 %v4994_v2, %v1118_v32  ;;  %v1130_v10 = vshrl.u32 %v4985_v19, %v1118_v32 }
 0x104   : > { %v4281_v51 = vsub.s32 %v1059_v57, %v1062_v60  ;;  %v1111_v55 = vor.u32 8388608, %v1110_v31  ;;  %v1133_v34 = vshrl.u32 %v4986_v46, %v1118_v32  ;;  %v4285_v22 = vmul.f32 %v3976_v20, %v144_v37 }
 0x105   : > { %v980_v47 = vsel %vm897_vm8, %v979_v42, %v978_v38  ;;  %v1122_v25 = vor.u32 %v1121_v29, %v1120_v40  ;;  %v1125_v6 = vor.u32 %v1124_v33, %v1123_v9  ;;  %vm1135_vm10 = vcmp.lt.s32.totalorder %v1116_v26, 1 }
 0x106   : > { %v983_v56 = vsel %vm4252_vm14, %v3979_v11, %v980_v47  ;;  %v1065_v8 = vsub.s32 0, %v4281_v51  ;;  %v1128_v57 = vor.u32 %v1127_v36, %v1126_v52  ;;  %v1131_v60 = vor.u32 %v1130_v10, %v1129_v61 }
 0x107   : > { %3204 = vcosq.f32 %v983_v56  ;;  %v4995_v31 = vmov 683565275   ;;  %v1134_v44 = vor.u32 %v1133_v34, %v1132_v59  ;;  %vm1138_vm6 = vcmp.lt.s32.totalorder %v1116_v26, 4 }
 0x108   : > { %v1119_v28 = vshrl.u32 %v4995_v31, %v1118_v32  ;;  %3206 = vsinq.f32 %v983_v56  ;;  %v2993_v37 = vmin.u32 %v1065_v8, %v4281_v51  ;;  %vm1137_vm7 = vcmp.lt.s32.totalorder %v1116_v26, 3 }
 0x109   : > { %v1140_v42 = vsel %vm1138_vm6, %v1128_v57, 2102212464  ;;  %vm1001_vm8 = vcmp.lt.s32.totalorder %v4090_v35, 0  ;;  %vm1136_vm12 = vcmp.lt.s32.totalorder %v1116_v26, 2  ;;  %v1143_v47 = vsel %vm1135_vm10, %v1122_v25, %v1125_v6 }
 0x10a   : > { %v1144_v62 = vsel %vm1138_vm6, %v1131_v60, 920167782  ;;  %v1151_v38 = vshll.u32 %v1111_v55, 8  ;;  %v989_v61 = vand.u32 3, %v988_v24  ;;  %v1055_v32 = vadd.s32 %v4213_v41, %v4219_v50 }
 0x10b   : > { %v1067_v34 = vclz %v2993_v37  ;;  %v1147_v56 = vsel %vm1135_vm10, %v1125_v6, %v1128_v57  ;;  %v1139_v8 = vsel %vm1135_vm10, %v1119_v28, %v1122_v25  ;;  %v1141_v59 = vsel %vm1137_vm7, %v1125_v6, %v1140_v42 }
 0x10c   : > { %v1145_v40 = vsel %vm1137_vm7, %v1128_v57, %v1144_v62  ;;  %v1148_v9 = vsel %vm1138_vm6, %v1134_v44, 1326507024  ;;  %vm4949_vm15 = vweird.f32 %v3979_v11  ;;  %v4996_v52 = vand.u32 2147483647, %v4090_v35 }
 0x10d   : > { %v2994_v41 = vadd.s32 4294967294, %v1067_v34  ;;  %v1085_v50 = vsub.s32 4, %v4269_v23  ;;  %v1146_v24 = vsel %vm1136_vm12, %v1143_v47, %v1145_v40  ;;  %v1149_v28 = vsel %vm1137_vm7, %v1131_v60, %v1148_v9 }
 0x10e   : > { %vm4309_vm0 = vcmp.le.f32.partialorder %v4996_v52, 0.7853982  ;;  %v1150_v25 = vsel %vm1136_vm12, %v1147_v56, %v1149_v28  ;;  %v4317_v29 = vmul.u32.u64.low %v1151_v38, %v1146_v24  ;;  %v4318_v33 = vmul.u32.u64.high %v1151_v38, %v1146_v24, %v4317_v29 }
 0x10f   : > { %v1210_v44 = vand.u32 2139095040, %v4285_v22  ;;  %vm2995_vm4 = vcmp.lt.s32.totalorder %v2994_v41, 0  ;;  %v1142_v36 = vsel %vm1136_vm12, %v1139_v8, %v1141_v59  ;;  %vm990_vm14 = vcmp.lt.s32.totalorder %v989_v61, 2 }
 0x110   : > { %v4323_v10 = vmul.u32.u64.low %v1151_v38, %v1150_v25  ;;  %v4324_v6 = vmul.u32.u64.high %v1151_v38, %v1150_v25, %v4323_v10  ;;  %vm991_vm10 = vcmp.eq.s32.totalorder %v989_v61, 0  ;;  %v1070_v57 = vsel %vm2995_vm4, 0, %v2994_v41 }
 0x111   : > { %v1211_v37 = vshrl.u32 %v1210_v44, 23  ;;  %vm994_vm6 = vcmp.eq.s32.totalorder %v989_v61, 2  ;;  %v1071_v60 = vsub.s32 32, %v1070_v57  ;;  %v1072_v42 = vshll.u32 %v4281_v51, %v1070_v57  ;;  %v4327_v62 = vpop.eup %3204 }
 0x112   : > { %v1075_v47 = vsub.s32 4294967266, %v1070_v57  ;;  %4999 = vst [vmem:[#allocation19_spill] sm:$0xff] %v4327_v62  ;;  %v1158_v34 = vmul.u32 %v1151_v38, %v1142_v36  ;;  %v1161_v56 = vadd.s32 1, %v4318_v33  ;;  %v132_v26 = vadd.s32 %v3375_v4, %v4266_v63  ;;  %v4332_v8 = vpop.eup %3206 }
 0x113   : > { %v3000_v40 = vadd.s32 4294967169, %v1211_v37  ;;  %v4942_v59 = vxor.u32 2147483648, %v4327_v62  ;;  %v1073_v9 = vshrl.u32 %v1055_v32, %v1071_v60  ;;  %v1086_v51 = vsel %vm1001_vm8, %v1085_v50, %v4269_v23 }
 0x114   : > { %v1076_v52 = vadd.s32 127, %v1075_v47  ;;  %v4943_v41 = vxor.u32 2147483648, %v4332_v8  ;;  %vm1160_vm7 = vc.u32 %v4324_v6, %v4317_v29  ;;  %v4944_v38 = vand.u32 2147483647, %v4285_v22 }
 0x115   : > { %v1217_v24 = vadd.s32 1, %v3000_v40  ;;  %v996_v63 = vsel %vm994_vm6, %v4942_v59, %v4332_v8  ;;  %v1074_v32 = vor.u32 %v1073_v9, %v1072_v42  ;;  %v1162_v25 = vsel %vm1160_vm7, %v1161_v56, %v4318_v33 }
 0x116   : > { %v1077_v28 = vshll.u32 %v1076_v52, 23  ;;  %v993_v23 = vsel %vm991_vm10, %v4327_v62, %v4943_v41  ;;  %v4353_v50 = vsel %vm4309_vm0, 0, %v1086_v51  ;;  %v1163_v44 = vadd.s32 %v1162_v25, %v1158_v34 }
 0x117   : > { %5000 = vst [vmem:[#allocation20_spill] sm:$0xff] %v4353_v50  ;;  %vm1218_vm12 = vcmp.gt.s32.totalorder %v1217_v24, 0  ;;  %v997_v36 = vsel %vm990_vm14, %v993_v23, %v996_v63  ;;  %v1081_v57 = vcvt.s32.f32 %v1074_v32  ;;  %v1092_v56 = vadd.s32 3, %v4353_v50 }
 0x118   : > { %v1078_v10 = vor.u32 4788187, %v1077_v28  ;;  %v1219_v37 = vsel %vm1218_vm12, %v1217_v24, 0  ;;  %v998_v60 = vsel %vm4949_vm15, nan, %v997_v36  ;;  %v1164_v33 = vadd.s32 536870912, %v1163_v44 }
 0x119   : > { %v1221_v42 = vand.u32 31, %v1219_v37  ;;  %1526 = vst [vmem:[%s3730_s29 + $0x70] sm:$0xff] %v998_v60  ;;  %v1214_v40 = vand.u32 8388607, %v4944_v38  ;;  %v1220_v34 = vshrl.u32 %v1219_v37, 5  ;;  %v145_v52 = vcvt.s32.f32 %v132_v26 }
 0x11a   : > { %v1079_v47 = vand.u32 2147483647, %v1078_v10  ;;  %v4362_v9 = vshrl.u32 %v1164_v33, 30  ;;  %v4374_v60 = vand.u32 3, %v1092_v56  ;;  %vm4955_vm15 = vweird.f32 %v4090_v35 }
 0x11b   : > { %v1222_v61 = vsub.s32 32, %v1221_v42  ;;  %v1224_v24 = vshll.u32 %v4995_v31, %v1221_v42  ;;  %v1227_v63 = vshll.u32 %v4992_v16, %v1221_v42  ;;  %v1230_v32 = vshll.u32 %v4993_v7, %v1221_v42 }
 0x11c   : > { %v1082_v51 = vmul.f32 %v1081_v57, %v1079_v47  ;;  %v1166_v28 = vshll.u32 %v4362_v9, 30  ;;  %v1233_v23 = vshll.u32 %v4994_v2, %v1221_v42  ;;  %v1236_v36 = vshll.u32 %v4985_v19, %v1221_v42 }
 0x11d   : > { %v1225_v25 = vshrl.u32 %v4992_v16, %v1222_v61  ;;  %v1228_v37 = vshrl.u32 %v4993_v7, %v1222_v61  ;;  %v1231_v26 = vshrl.u32 %v4994_v2, %v1222_v61  ;;  %v1234_v57 = vshrl.u32 %v4985_v19, %v1222_v61 }
 0x11e   : > { %v1083_v10 = vxor.u32 2147483648, %v1082_v51  ;;  %v4376_v33 = vsub.s32 %v1163_v44, %v1166_v28  ;;  %v1215_v47 = vor.u32 8388608, %v1214_v40  ;;  %v1237_v59 = vshrl.u32 %v4986_v46, %v1222_v61 }
 0x11f   : > { %v1223_v38 = vshrl.u32 %v4995_v31, %v1222_v61  ;;  %v1226_v42 = vor.u32 %v1225_v25, %v1224_v24  ;;  %v4383_v11 = vmul.f32 %v3976_v20, %v145_v52  ;;  %v1229_v44 = vor.u32 %v1228_v37, %v1227_v63 }
 0x120   : > { %v1084_v41 = vsel %vm1001_vm8, %v1083_v10, %v1082_v51  ;;  %v1169_v56 = vsub.s32 0, %v4376_v33  ;;  %v1232_v28 = vor.u32 %v1231_v26, %v1230_v32  ;;  %v1235_v40 = vor.u32 %v1234_v57, %v1233_v23 }
 0x121   : > { %v1087_v50 = vsel %vm4309_vm0, %v4090_v35, %v1084_v41  ;;  %v1238_v62 = vor.u32 %v1237_v59, %v1236_v36  ;;  %vm1239_vm4 = vcmp.lt.s32.totalorder %v1220_v34, 1  ;;  %vm1105_vm8 = vcmp.lt.s32.totalorder %v4171_v30, 0 }
 0x122   : > { %3208 = vcosq.f32 %v1087_v50  ;;  %v2997_v61 = vmin.u32 %v1169_v56, %v4376_v33  ;;  %v1255_v51 = vshll.u32 %v1215_v47, 8  ;;  %v1189_v20 = vsub.s32 4, %v4362_v9 }
 0x123   : > { %3210 = vsinq.f32 %v1087_v50  ;;  %vm1241_vm14 = vcmp.lt.s32.totalorder %v1220_v34, 3  ;;  %vm1242_vm10 = vcmp.lt.s32.totalorder %v1220_v34, 4  ;;  %v1314_v55 = vand.u32 2139095040, %v4383_v11 }
 0x124   : > { %vm1095_vm0 = vcmp.eq.s32.totalorder %v4374_v60, 0  ;;  %v5001_v41 = vand.u32 2147483647, %v4171_v30  ;;  %v1171_v59 = vclz %v2997_v61  ;;  %vm1240_vm7 = vcmp.lt.s32.totalorder %v1220_v34, 2 }
 0x125   : > { %v1247_v50 = vsel %vm1239_vm4, %v1226_v42, %v1229_v44  ;;  %v1251_v24 = vsel %vm1239_vm4, %v1229_v44, %v1232_v28  ;;  %vm1094_vm12 = vcmp.lt.s32.totalorder %v4374_v60, 2  ;;  %v1243_v63 = vsel %vm1239_vm4, %v1223_v38, %v1226_v42 }
 0x126   : > { %vm4396_vm6 = vcmp.le.f32.partialorder %v5001_v41, 0.7853982  ;;  %v1244_v32 = vsel %vm1242_vm10, %v1232_v28, 2102212464  ;;  %v1248_v25 = vsel %vm1242_vm10, %v1235_v40, 920167782  ;;  %v1159_v57 = vadd.s32 %v4317_v29, %v4324_v6 }
 0x127   : > { %v1252_v23 = vsel %vm1242_vm10, %v1238_v62, 1326507024  ;;  %v2998_v36 = vadd.s32 4294967294, %v1171_v59  ;;  %v1245_v10 = vsel %vm1241_vm14, %v1229_v44, %v1244_v32  ;;  %v1249_v37 = vsel %vm1241_vm14, %v1232_v28, %v1248_v25 }
 0x128   : > { %v1253_v26 = vsel %vm1241_vm14, %v1235_v40, %v1252_v23  ;;  %v1250_v47 = vsel %vm1240_vm7, %v1247_v50, %v1249_v37  ;;  %v1315_v38 = vshrl.u32 %v1314_v55, 23  ;;  %v1246_v62 = vsel %vm1240_vm7, %v1243_v63, %v1245_v10 }
 0x129   : > { %v1254_v56 = vsel %vm1240_vm7, %v1251_v24, %v1253_v26  ;;  %vm2999_vm4 = vcmp.lt.s32.totalorder %v2998_v36, 0  ;;  %v4416_v44 = vmul.u32.u64.low %v1255_v51, %v1250_v47  ;;  %v4417_v59 = vmul.u32.u64.high %v1255_v51, %v1250_v47, %v4416_v44 }
 0x12a   : > { %v4413_v42 = vmul.u32.u64.low %v1255_v51, %v1254_v56  ;;  %v4414_v61 = vmul.u32.u64.high %v1255_v51, %v1254_v56, %v4413_v42  ;;  %v1174_v41 = vsel %vm2999_vm4, 0, %v2998_v36  ;;  %v3004_v28 = vadd.s32 4294967169, %v1315_v38 }
 0x12b   : > { %v1175_v40 = vsub.s32 32, %v1174_v41  ;;  %v1176_v29 = vshll.u32 %v4376_v33, %v1174_v41  ;;  %v1179_v6 = vsub.s32 4294967266, %v1174_v41  ;;  %v1190_v55 = vsel %vm1105_vm8, %v1189_v20, %v4362_v9 }
 0x12c   : > { %v4424_v50 = vpop.eup %3208  ;;  %vm1098_vm14 = vcmp.eq.s32.totalorder %v4374_v60, 2  ;;  %v4952_v34 = vand.u32 2147483647, %v4383_v11  ;;  %v1321_v24 = vadd.s32 1, %v3004_v28  ;;  %v119_v63 = vadd.s32 96, %v3370_v1 }
 0x12d   : > { %v4429_v32 = vpop.eup %3210  ;;  %v4950_v25 = vxor.u32 2147483648, %v4424_v50  ;;  %v1177_v23 = vshrl.u32 %v1159_v57, %v1175_v40  ;;  %v1180_v33 = vadd.s32 127, %v1179_v6  ;;  %v1262_v36 = vmul.u32 %v1255_v51, %v1246_v62 }
 0x12e   : > { %v4951_v10 = vxor.u32 2147483648, %v4429_v32  ;;  %v4435_v9 = vsel %vm4396_vm6, 0, %v1190_v55  ;;  %vm1264_vm10 = vc.u32 %v4414_v61, %v4416_v44  ;;  %v1265_v20 = vadd.s32 1, %v4417_v59 }
 0x12f   : > { %5004 = vst [vmem:[#allocation21_spill] sm:$0xff] %v4435_v9  ;;  %v1100_v1 = vsel %vm1098_vm14, %v4950_v25, %v4429_v32  ;;  %v1178_v37 = vor.u32 %v1177_v23, %v1176_v29  ;;  %v1181_v26 = vshll.u32 %v1180_v33, 23  ;;  %vm1322_vm7 = vcmp.gt.s32.totalorder %v1321_v24, 0 }
 0x130   : > { %v1097_v51 = vsel %vm1095_vm0, %v4424_v50, %v4951_v10  ;;  %v1266_v57 = vsel %vm1264_vm10, %v1265_v20, %v4417_v59  ;;  %v1323_v47 = vsel %vm1322_vm7, %v1321_v24, 0  ;;  %v1196_v28 = vadd.s32 3, %v4435_v9 }
 0x131   : > { %v1101_v56 = vsel %vm1094_vm12, %v1097_v51, %v1100_v1  ;;  %v1182_v38 = vor.u32 4788187, %v1181_v26  ;;  %v1185_v62 = vcvt.s32.f32 %v1178_v37  ;;  %v1267_v42 = vadd.s32 %v1266_v57, %v1262_v36 }
 0x132   : > { %v1102_v41 = vsel %vm4955_vm15, nan, %v1101_v56  ;;  %v1325_v40 = vand.u32 31, %v1323_v47  ;;  %v1318_v55 = vand.u32 8388607, %v4952_v34  ;;  %v133_v59 = vadd.s32 %v3375_v4, %v119_v63 }
 0x133   : > { %1527 = vst [vmem:[%s3730_s29 + $0x80] sm:$0xff] %v1102_v41  ;;  %v1183_v29 = vand.u32 2147483647, %v1182_v38  ;;  %v1268_v6 = vadd.s32 536870912, %v1267_v42  ;;  %v4458_v24 = vshrl.u32 %v1323_v47, 5  ;;  %vm1209_vm12 = vcmp.lt.s32.totalorder %v4285_v22, 0 }
 0x134   : > { %v1326_v60 = vsub.s32 32, %v1325_v40  ;;  %v1328_v23 = vshll.u32 %v4995_v31, %v1325_v40  ;;  %v1331_v33 = vshll.u32 %v4992_v16, %v1325_v40  ;;  %v1334_v1 = vshll.u32 %v4993_v7, %v1325_v40 }
 0x135   : > { %v1186_v36 = vmul.f32 %v1185_v62, %v1183_v29  ;;  %v4462_v20 = vshrl.u32 %v1268_v6, 30  ;;  %v1337_v37 = vshll.u32 %v4994_v2, %v1325_v40  ;;  %v1340_v63 = vshll.u32 %v4985_v19, %v1325_v40 }
 0x136   : > { %v1329_v26 = vshrl.u32 %v4992_v16, %v1326_v60  ;;  %v1332_v51 = vshrl.u32 %v4993_v7, %v1326_v60  ;;  %v1335_v4 = vshrl.u32 %v4994_v2, %v1326_v60  ;;  %v1319_v56 = vor.u32 8388608, %v1318_v55 }
 0x137   : > { %v1187_v57 = vxor.u32 2147483648, %v1186_v36  ;;  %v1270_v47 = vshll.u32 %v4462_v20, 30  ;;  %v1338_v38 = vshrl.u32 %v4985_v19, %v1326_v60  ;;  %v4472_v62 = vand.u32 3, %v1196_v28 }
 0x138   : > { %v1327_v41 = vshrl.u32 %v4995_v31, %v1326_v60  ;;  %v1330_v29 = vor.u32 %v1329_v26, %v1328_v23  ;;  %v1341_v6 = vshrl.u32 %v4986_v46, %v1326_v60  ;;  %v1333_v34 = vor.u32 %v1332_v51, %v1331_v33 }
 0x139   : > { %v1188_v25 = vsel %vm1105_vm8, %v1187_v57, %v1186_v36  ;;  %v4478_v10 = vsub.s32 %v1267_v42, %v1270_v47  ;;  %v1336_v40 = vor.u32 %v1335_v4, %v1334_v1  ;;  %v1339_v35 = vor.u32 %v1338_v38, %v1337_v37 }
 0x13a   : > { %v1191_v55 = vsel %vm4396_vm6, %v4171_v30, %v1188_v25  ;;  %v1342_v9 = vor.u32 %v1341_v6, %v1340_v63  ;;  %vm1343_vm0 = vcmp.lt.s32.totalorder %v4458_v24, 1  ;;  %v4486_v60 = vshll.u32 %v1319_v56, 8  ;;  %v3229_v56 = vld [vmem:[%s4894_s1] ss:$0 sm:$0xff] }
 0x13b   : > { %3212 = vcosq.f32 %v1191_v55  ;;  %v1273_v28 = vsub.s32 0, %v4478_v10  ;;  %v146_v23 = vcvt.s32.f32 %v133_v59  ;;  %vm1344_vm8 = vcmp.lt.s32.totalorder %v4458_v24, 2 }
 0x13c   : > { %3214 = vsinq.f32 %v1191_v55  ;;  %vm1345_vm4 = vcmp.lt.s32.totalorder %v4458_v24, 3  ;;  %vm1346_vm14 = vcmp.lt.s32.totalorder %v4458_v24, 4  ;;  %v1347_v25 = vsel %vm1343_vm0, %v1327_v41, %v1330_v29 }
 0x13d   : > { %v3001_v52 = vmin.u32 %v1273_v28, %v4478_v10  ;;  %v1348_v42 = vsel %vm1346_vm14, %v1336_v40, 2102212464  ;;  %v1351_v33 = vsel %vm1343_vm0, %v1330_v29, %v1333_v34  ;;  %vm1199_vm6 = vcmp.eq.s32.totalorder %v4472_v62, 0 }
 0x13e   : > { %v1349_v59 = vsel %vm1345_vm4, %v1333_v34, %v1348_v42  ;;  %v1352_v36 = vsel %vm1346_vm14, %v1339_v35, 920167782  ;;  %v1355_v1 = vsel %vm1343_vm0, %v1333_v34, %v1336_v40  ;;  %v1356_v37 = vsel %vm1346_vm14, %v1342_v9, 1326507024 }
 0x13f   : > { %vm1198_vm10 = vcmp.lt.s32.totalorder %v4472_v62, 2  ;;  %vm1202_vm7 = vcmp.eq.s32.totalorder %v4472_v62, 2  ;;  %v5005_v26 = vand.u32 2147483647, %v4285_v22  ;;  %v1275_v4 = vclz %v3001_v52 }
 0x140   : > { %v1625_v63 = vand.u32 3, %v3558_v53  ;;  %v4511_v57 = vand.u32 3, %v3629_v3  ;;  %vm4957_vm9 = vweird.f32 %v4171_v30  ;;  %v1293_v34 = vsub.s32 4, %v4462_v20 }
 0x141   : > { %vm4505_vm15 = vcmp.le.f32.partialorder %v5005_v26, 0.7853982  ;;  %v1353_v9 = vsel %vm1345_vm4, %v1336_v40, %v1352_v36  ;;  %v1357_v47 = vsel %vm1345_vm4, %v1339_v35, %v1356_v37  ;;  %v4522_v38 = vmul.f32 %v3229_v56, %v146_v23 }
 0x142   : > { %v3002_v53 = vadd.s32 4294967294, %v1275_v4  ;;  %v1350_v3 = vsel %vm1344_vm8, %v1347_v25, %v1349_v59  ;;  %v1354_v41 = vsel %vm1344_vm8, %v1351_v33, %v1353_v9  ;;  %v1358_v29 = vsel %vm1344_vm8, %v1355_v1, %v1357_v47 }
 0x143   : > { %v4531_v6 = vmul.u32.u64.low %v4486_v60, %v1358_v29  ;;  %v4532_v40 = vmul.u32.u64.high %v4486_v60, %v1358_v29, %v4531_v6  ;;  %v4535_v35 = vmul.u32.u64.low %v4486_v60, %v1354_v41  ;;  %v4536_v55 = vmul.u32.u64.high %v4486_v60, %v1354_v41, %v4535_v35 }
 0x144   : > { %v1263_v28 = vadd.s32 %v4416_v44, %v4414_v61  ;;  %vm3003_vm0 = vcmp.lt.s32.totalorder %v3002_v53, 0  ;;  %v1418_v23 = vand.u32 2139095040, %v4522_v38  ;;  %vm1627_vm4 = vcmp.eq.s32.totalorder %v1625_v63, 0 }
 0x145   : > { %v1278_v52 = vsel %vm3003_vm0, 0, %v3002_v53  ;;  %v1294_v24 = vsel %vm1209_vm12, %v1293_v34, %v4462_v20  ;;  %v1366_v25 = vmul.u32 %v4486_v60, %v1350_v3  ;;  %vm1626_vm8 = vcmp.lt.s32.totalorder %v1625_v63, 2  ;;  %v4546_v42 = vpop.eup %3212 }
 0x146   : > { %v1279_v33 = vsub.s32 32, %v1278_v52  ;;  %v1280_v59 = vshll.u32 %v4478_v10, %v1278_v52  ;;  %v1283_v36 = vsub.s32 4294967266, %v1278_v52  ;;  %vm1630_vm14 = vcmp.eq.s32.totalorder %v1625_v63, 2  ;;  %v4549_v61 = vpop.eup %3214 }
 0x147   : > { %v1203_v44 = vxor.u32 2147483648, %v4546_v42  ;;  %vm1368_vm0 = vc.u32 %v4532_v40, %v4535_v35  ;;  %v1369_v1 = vadd.s32 1, %v4536_v55  ;;  %v5008_v20 = vxor.u32 2147483648, %v3692_v54 }
 0x148   : > { %v1200_v37 = vxor.u32 2147483648, %v4549_v61  ;;  %v1281_v26 = vshrl.u32 %v1263_v28, %v1279_v33  ;;  %v1284_v10 = vadd.s32 127, %v1283_v36  ;;  %v1419_v4 = vshrl.u32 %v1418_v23, 23 }
 0x149   : > { %v1629_v60 = vsel %vm1627_vm4, %v3684_v39, %v5008_v20  ;;  %v1204_v34 = vsel %vm1202_vm7, %v1203_v44, %v4549_v61  ;;  %v4567_v9 = vsel %vm4505_vm15, 0, %v1294_v24  ;;  %v1370_v47 = vsel %vm1368_vm0, %v1369_v1, %v4536_v55 }
 0x14a   : > { %v5009_v56 = vxor.u32 2147483648, %v3684_v39  ;;  %v1201_v3 = vsel %vm1199_vm6, %v4546_v42, %v1200_v37  ;;  %v1282_v41 = vor.u32 %v1281_v26, %v1280_v59  ;;  %v1285_v29 = vshll.u32 %v1284_v10, 23 }
 0x14b   : > { %v1371_v6 = vadd.s32 %v1370_v47, %v1366_v25  ;;  %v1205_v28 = vsel %vm1198_vm10, %v1201_v3, %v1204_v34  ;;  %v1415_v23 = vand.u32 2147483647, %v4522_v38  ;;  %v3008_v55 = vadd.s32 4294967169, %v1419_v4 }
 0x14c   : > { %v1632_v53 = vsel %vm1630_vm14, %v5009_v56, %v3692_v54  ;;  %v1206_v39 = vsel %vm4957_vm9, nan, %v1205_v28  ;;  %v1286_v54 = vor.u32 4788187, %v1285_v29  ;;  %v1289_v24 = vcvt.s32.f32 %v1282_v41 }
 0x14d   : > { %v1633_v52 = vsel %vm1626_vm8, %v1629_v60, %v1632_v53  ;;  %v1372_v33 = vadd.s32 536870912, %v1371_v6  ;;  %1528 = vst [vmem:[%s3730_s29 + $0x90] sm:$0xff] %v1206_v39  ;;  %v1300_v59 = vadd.s32 3, %v4567_v9  ;;  %v1425_v36 = vadd.s32 1, %v3008_v55 }
 0x14e   : > { %v1634_v62 = vsel %vm259_vm13, nan, %v1633_v52  ;;  %vm1729_vm6 = vcmp.lt.s32.totalorder %v4511_v57, 2  ;;  %v1287_v25 = vand.u32 2147483647, %v1286_v54  ;;  %vm1730_vm10 = vcmp.eq.s32.totalorder %v4511_v57, 0 }
 0x14f   : > { %v1373_v1 = vshrl.u32 %v1372_v33, 30  ;;  %2871 = vst [vmem:[%s3730_s29 + $0x8] sm:$0xff] %v1634_v62  ;;  %vm1733_vm7 = vcmp.eq.s32.totalorder %v4511_v57, 2  ;;  %v5010_v63 = vand.u32 2147483647, %v4383_v11  ;;  %vm1426_vm8 = vcmp.gt.s32.totalorder %v1425_v36, 0 }
 0x150   : > { %v1422_v60 = vand.u32 8388607, %v1415_v23  ;;  %v1732_v26 = vsel %vm1730_vm10, %v3742_v18, %v5013_v13  ;;  %v5014_v10 = vxor.u32 2147483648, %v3742_v18  ;;  %v1290_v34 = vmul.f32 %v1289_v24, %v1287_v25 }
 0x151   : > { %vm4594_vm4 = vcmp.le.f32.partialorder %v5010_v63, 0.7853982  ;;  %v1374_v47 = vshll.u32 %v1373_v1, 30  ;;  %v1397_v56 = vsub.s32 4, %v1373_v1  ;;  %v1427_v53 = vsel %vm1426_vm8, %v1425_v36, 0 }
 0x152   : > { %v1735_v4 = vsel %vm1733_vm7, %v5014_v10, %v3744_v58  ;;  %v4606_v3 = vand.u32 3, %v1300_v59  ;;  %vm1313_vm13 = vcmp.lt.s32.totalorder %v4383_v11, 0  ;;  %v1429_v41 = vand.u32 31, %v1427_v53 }
 0x153   : > { %v1736_v29 = vsel %vm1729_vm6, %v1732_v26, %v1735_v4  ;;  %v1291_v28 = vxor.u32 2147483648, %v1290_v34  ;;  %v1367_v55 = vadd.s32 %v4535_v35, %v4532_v40  ;;  %v4613_v52 = vsub.s32 %v1371_v6, %v1374_v47 }
 0x154   : > { %v1737_v18 = vsel %vm363_vm3, nan, %v1736_v29  ;;  %v1398_v58 = vsel %vm1313_vm13, %v1397_v56, %v1373_v1  ;;  %v1423_v39 = vor.u32 8388608, %v1422_v60  ;;  %v1430_v54 = vsub.s32 32, %v1429_v41 }
 0x155   : > { %2872 = vst [vmem:[%s3730_s29 + $0x18] sm:$0xff] %v1737_v18  ;;  %v4621_v24 = vand.u32 3, %v3735_v43  ;;  %v1292_v57 = vsel %vm1209_vm12, %v1291_v28, %v1290_v34  ;;  %v1377_v33 = vsub.s32 0, %v4613_v52  ;;  %v1432_v40 = vshll.u32 %v4995_v31, %v1429_v41 }
 0x156   : > { %v1435_v35 = vshll.u32 %v4992_v16, %v1429_v41  ;;  %v1295_v14 = vsel %vm4505_vm15, %v4285_v22, %v1292_v57  ;;  %v1433_v6 = vshrl.u32 %v4992_v16, %v1430_v54  ;;  %v1436_v59 = vshrl.u32 %v4993_v7, %v1430_v54 }
 0x157   : > { %v1438_v43 = vshll.u32 %v4993_v7, %v1429_v41  ;;  %3216 = vcosq.f32 %v1295_v14  ;;  %v3005_v36 = vmin.u32 %v1377_v33, %v4613_v52  ;;  %v1428_v62 = vshrl.u32 %v1427_v53, 5 }
 0x158   : > { %v1439_v25 = vshrl.u32 %v4994_v2, %v1430_v54  ;;  %3218 = vsinq.f32 %v1295_v14  ;;  %v1431_v1 = vshrl.u32 %v4995_v31, %v1430_v54  ;;  %v1441_v63 = vshll.u32 %v4994_v2, %v1429_v41 }
 0x159   : > { %v4638_v60 = vshll.u32 %v1423_v39, 8  ;;  %vm1306_vm3 = vcmp.eq.s32.totalorder %v4606_v3, 2  ;;  %v1379_v16 = vclz %v3005_v36  ;;  %v4643_v51 = vsel %vm4594_vm4, 0, %v1398_v58 }
 0x15a   : > { %v1434_v7 = vor.u32 %v1433_v6, %v1432_v40  ;;  %v1437_v13 = vor.u32 %v1436_v59, %v1435_v35  ;;  %vm1303_vm15 = vcmp.eq.s32.totalorder %v4606_v3, 0  ;;  %v1440_v26 = vor.u32 %v1439_v25, %v1438_v43 }
 0x15b   : > { %v1442_v10 = vshrl.u32 %v4985_v19, %v1430_v54  ;;  %v1444_v31 = vshll.u32 %v4985_v19, %v1429_v41  ;;  %v1445_v2 = vshrl.u32 %v4986_v46, %v1430_v54  ;;  %vm1832_vm12 = vcmp.lt.s32.totalorder %v4621_v24, 2 }
 0x15c   : > { %vm1302_vm14 = vcmp.lt.s32.totalorder %v4606_v3, 2  ;;  %v3006_v4 = vadd.s32 4294967294, %v1379_v16  ;;  %vm1447_vm0 = vcmp.lt.s32.totalorder %v1428_v62, 1  ;;  %vm1448_vm6 = vcmp.lt.s32.totalorder %v1428_v62, 2 }
 0x15d   : > { %vm1449_vm10 = vcmp.lt.s32.totalorder %v1428_v62, 3  ;;  %vm1299_vm7 = vweird.f32 %v4285_v22  ;;  %v1443_v34 = vor.u32 %v1442_v10, %v1441_v63  ;;  %v1446_v47 = vor.u32 %v1445_v2, %v1444_v31 }
 0x15e   : > { %vm1450_vm8 = vcmp.lt.s32.totalorder %v1428_v62, 4  ;;  %v1451_v56 = vsel %vm1447_vm0, %v1431_v1, %v1434_v7  ;;  %vm3007_vm9 = vcmp.lt.s32.totalorder %v3006_v4, 0  ;;  %v1455_v29 = vsel %vm1447_vm0, %v1434_v7, %v1437_v13 }
 0x15f   : > { %v1452_v53 = vsel %vm1450_vm8, %v1440_v26, 2102212464  ;;  %v1459_v19 = vsel %vm1447_vm0, %v1437_v13, %v1440_v26  ;;  %v1382_v41 = vsel %vm3007_vm9, 0, %v3006_v4  ;;  %v1456_v28 = vsel %vm1450_vm8, %v1443_v34, 920167782 }
 0x160   : > { %v1453_v46 = vsel %vm1449_vm10, %v1437_v13, %v1452_v53  ;;  %v1460_v18 = vsel %vm1450_vm8, %v1446_v47, 1326507024  ;;  %v1383_v58 = vsub.s32 32, %v1382_v41  ;;  %v1384_v39 = vshll.u32 %v4613_v52, %v1382_v41 }
 0x161   : > { %v1387_v54 = vsub.s32 4294967266, %v1382_v41  ;;  %v4655_v57 = vadd.s32 3, %v4643_v51  ;;  %v1454_v33 = vsel %vm1448_vm6, %v1451_v56, %v1453_v46  ;;  %v1457_v40 = vsel %vm1449_vm10, %v1440_v26, %v1456_v28  ;;  %v4661_v14 = vpop.eup %3216 }
 0x162   : > { %v1461_v35 = vsel %vm1449_vm10, %v1443_v34, %v1460_v18  ;;  %vm1833_vm0 = vcmp.eq.s32.totalorder %v4621_v24, 0  ;;  %v1385_v6 = vshrl.u32 %v1367_v55, %v1383_v58  ;;  %v1458_v43 = vsel %vm1448_vm6, %v1455_v29, %v1457_v40  ;;  %v4665_v36 = vpop.eup %3218 }
 0x163   : > { %v1388_v59 = vadd.s32 127, %v1387_v54  ;;  %v1462_v52 = vsel %vm1448_vm6, %v1459_v19, %v1461_v35  ;;  %v1307_v25 = vxor.u32 2147483648, %v4661_v14  ;;  %v5015_v16 = vxor.u32 2147483648, %v3853_v17  ;;  %v5020_v35 = vld [vmem:[#allocation13_spill] sm:$0xff] }
 0x164   : > { %v4669_v1 = vmul.u32.u64.low %v4638_v60, %v1462_v52  ;;  %v4670_v63 = vmul.u32.u64.high %v4638_v60, %v1462_v52, %v4669_v1  ;;  %v1304_v13 = vxor.u32 2147483648, %v4665_v36  ;;  %v1386_v55 = vor.u32 %v1385_v6, %v1384_v39 }
 0x165   : > { %v1835_v7 = vsel %vm1833_vm0, %v3840_v12, %v5015_v16  ;;  %v1389_v26 = vshll.u32 %v1388_v59, 23  ;;  %vm1836_vm9 = vcmp.eq.s32.totalorder %v4621_v24, 2  ;;  %v1308_v62 = vsel %vm1306_vm3, %v1307_v25, %v4665_v36  ;;  %v5022_v59 = vld [vmem:[#allocation12_spill] sm:$0xff] }
 0x166   : > { %v4683_v10 = vmul.u32.u64.low %v4638_v60, %v1458_v43  ;;  %v4684_v31 = vmul.u32.u64.high %v4638_v60, %v1458_v43, %v4683_v10  ;;  %v5016_v2 = vxor.u32 2147483648, %v3840_v12  ;;  %v1305_v34 = vsel %vm1303_vm15, %v4661_v14, %v1304_v13 }
 0x167   : > { %v1390_v47 = vor.u32 4788187, %v1389_v26  ;;  %v1393_v56 = vcvt.s32.f32 %v1386_v55  ;;  %v1309_v29 = vsel %vm1302_vm14, %v1305_v34, %v1308_v62  ;;  %v1470_v19 = vmul.u32 %v4638_v60, %v1454_v33  ;;  %v5024_v55 = vld [vmem:[#allocation16_spill] sm:$0xff]  ;;  %v5026_v62 = vld [vmem:[#allocation15_spill] sm:$0xff] }
 0x168   : > { %v1838_v4 = vsel %vm1836_vm9, %v5016_v2, %v3853_v17  ;;  %vm1472_vm3 = vc.u32 %v4670_v63, %v4683_v10  ;;  %v1310_v17 = vsel %vm1299_vm7, nan, %v1309_v29  ;;  %v1934_v46 = vand.u32 3, %v3844_v5 }
 0x169   : > { %v1839_v53 = vsel %vm1832_vm12, %v1835_v7, %v1838_v4  ;;  %v1391_v41 = vand.u32 2147483647, %v1390_v47  ;;  %v2037_v24 = vand.u32 3, %v3937_v49  ;;  %1529 = vst [vmem:[%s3730_s29 + $0xa0] sm:$0xff] %v1310_v17  ;;  %v1473_v3 = vadd.s32 1, %v4684_v31 }
 0x16a   : > { %v1840_v12 = vsel %vm467_vm5, nan, %v1839_v53  ;;  %v2140_v60 = vand.u32 3, %v4036_v45  ;;  %v2243_v28 = vand.u32 3, %v4153_v21  ;;  %v2346_v18 = vand.u32 3, %v4260_v27 }
 0x16b   : > { %2873 = vst [vmem:[%s3730_s29 + $0x28] sm:$0xff] %v1840_v12  ;;  %v1394_v15 = vmul.f32 %v1393_v56, %v1391_v41  ;;  %vm1935_vm5 = vcmp.lt.s32.totalorder %v1934_v46, 2  ;;  %vm1936_vm15 = vcmp.eq.s32.totalorder %v1934_v46, 0  ;;  %vm1939_vm12 = vcmp.eq.s32.totalorder %v1934_v46, 2  ;;  %v5030_v12 = vld [vmem:[#allocation18_spill] sm:$0xff]  ;;  %v5032_v41 = vld [vmem:[#allocation17_spill] sm:$0xff] }
 0x16c   : > { %v1474_v5 = vsel %vm1472_vm3, %v1473_v3, %v4684_v31  ;;  %v5017_v49 = vxor.u32 2147483648, %v3940_v0  ;;  %v5018_v45 = vxor.u32 2147483648, %v3933_v48  ;;  %vm2038_vm14 = vcmp.lt.s32.totalorder %v2037_v24, 2 }
 0x16d   : > { %v1395_v27 = vxor.u32 2147483648, %v1394_v15  ;;  %v1475_v39 = vadd.s32 %v1474_v5, %v1470_v19  ;;  %vm2039_vm6 = vcmp.eq.s32.totalorder %v2037_v24, 0  ;;  %v5021_v6 = vxor.u32 2147483648, %v5020_v35 }
 0x16e   : > { %v1938_v58 = vsel %vm1936_vm15, %v3933_v48, %v5017_v49  ;;  %v1941_v21 = vsel %vm1939_vm12, %v5018_v45, %v3940_v0  ;;  %vm2042_vm10 = vcmp.eq.s32.totalorder %v2037_v24, 2  ;;  %vm2141_vm8 = vcmp.lt.s32.totalorder %v2140_v60, 2  ;;  %v5035_v49 = vld [vmem:[#allocation19_spill] sm:$0xff] }
 0x16f   : > { %v1942_v54 = vsel %vm1935_vm5, %v1938_v58, %v1941_v21  ;;  %v2041_v43 = vsel %vm2039_vm6, %v5022_v59, %v5021_v6  ;;  %v1396_v52 = vsel %vm1313_vm13, %v1395_v27, %v1394_v15  ;;  %v1476_v48 = vadd.s32 536870912, %v1475_v39  ;;  %v5037_v27 = vld [vmem:[#allocation20_spill] sm:$0xff] }
 0x170   : > { %v1943_v40 = vsel %vm571_vm11, nan, %v1942_v54  ;;  %v5023_v0 = vxor.u32 2147483648, %v5022_v59  ;;  %vm2142_vm0 = vcmp.eq.s32.totalorder %v2140_v60, 0  ;;  %v1399_v16 = vsel %vm4594_vm4, %v4383_v11, %v1396_v52 }
 0x171   : > { %2874 = vst [vmem:[%s3730_s29 + $0x38] sm:$0xff] %v1943_v40  ;;  %v5025_v26 = vxor.u32 2147483648, %v5024_v55  ;;  %vm2145_vm11 = vcmp.eq.s32.totalorder %v2140_v60, 2  ;;  %3220 = vcosq.f32 %v1399_v16  ;;  %v4741_v2 = vshrl.u32 %v1476_v48, 30  ;;  %v5040_v40 = vld [vmem:[#allocation11_spill] sm:$0xff] }
 0x172   : > { %v2044_v1 = vsel %vm2042_vm10, %v5023_v0, %v5020_v35  ;;  %v5028_v47 = vxor.u32 2147483648, %v5026_v62  ;;  %3222 = vsinq.f32 %v1399_v16  ;;  %vm2245_vm4 = vcmp.eq.s32.totalorder %v2243_v28, 0  ;;  %v5044_v0 = vld [vmem:[#allocation21_spill] sm:$0xff] }
 0x173   : > { %v2045_v7 = vsel %vm2038_vm14, %v2041_v43, %v2044_v1  ;;  %v2144_v31 = vsel %vm2142_vm0, %v5026_v62, %v5025_v26  ;;  %v1478_v53 = vshll.u32 %v4741_v2, 30  ;;  %vm2244_vm13 = vcmp.lt.s32.totalorder %v2243_v28, 2 }
 0x174   : > { %v2046_v34 = vsel %vm675_vm2, nan, %v2045_v7  ;;  %v2147_v56 = vsel %vm2145_vm11, %v5028_v47, %v5024_v55  ;;  %v5031_v17 = vxor.u32 2147483648, %v5030_v12  ;;  %vm2248_vm2 = vcmp.eq.s32.totalorder %v2243_v28, 2 }
 0x175   : > { %2875 = vst [vmem:[%s3730_s29 + $0x48] sm:$0xff] %v2046_v34  ;;  %v2148_v20 = vsel %vm2141_vm8, %v2144_v31, %v2147_v56  ;;  %vm2347_vm9 = vcmp.lt.s32.totalorder %v2346_v18, 2  ;;  %vm2348_vm3 = vcmp.eq.s32.totalorder %v2346_v18, 0  ;;  %vm2351_vm5 = vcmp.eq.s32.totalorder %v2346_v18, 2  ;;  %v5045_v34 = vld [vmem:[#allocation14_spill] sm:$0xff] }
 0x176   : > { %v2149_v19 = vsel %vm779_vm1, nan, %v2148_v20  ;;  %v2247_v46 = vsel %vm2245_vm4, %v5032_v41, %v5031_v17  ;;  %v1405_v24 = vand.u32 3, %v4655_v57  ;;  %v4758_v3 = vsub.s32 %v1475_v39, %v1478_v53  ;;  %v5038_v39 = vld [vmem:[#allocation10_spill] sm:$0xff] }
 0x177   : > { %2876 = vst [vmem:[%s3730_s29 + $0x58] sm:$0xff] %v2149_v19  ;;  %v5033_v60 = vxor.u32 2147483648, %v5032_v41  ;;  %v5034_v5 = vxor.u32 2147483648, %v4332_v8  ;;  %v5036_v28 = vxor.u32 2147483648, %v5035_v49  ;;  %v2449_v18 = vand.u32 3, %v5037_v27 }
 0x178   : > { %vm1403_vm1 = vweird.f32 %v4383_v11  ;;  %v1481_v57 = vsub.s32 0, %v4758_v3  ;;  %vm5039_vm15 = vweird.f32 %v5038_v39  ;;  %vm5041_vm12 = vweird.f32 %v5040_v40 }
 0x179   : > { %v2250_v15 = vsel %vm2248_vm2, %v5033_v60, %v5030_v12  ;;  %v2350_v58 = vsel %vm2348_vm3, %v5035_v49, %v5034_v5  ;;  %v2353_v21 = vsel %vm2351_vm5, %v5036_v28, %v4332_v8  ;;  %vm2450_vm14 = vcmp.lt.s32.totalorder %v2449_v18, 2 }
 0x17a   : > { %v2251_v45 = vsel %vm2244_vm13, %v2247_v46, %v2250_v15  ;;  %v2354_v33 = vsel %vm2347_vm9, %v2350_v58, %v2353_v21  ;;  %vm2451_vm6 = vcmp.eq.s32.totalorder %v2449_v18, 0  ;;  %vm2454_vm10 = vcmp.eq.s32.totalorder %v2449_v18, 2 }
 0x17b   : > { %v2252_v54 = vsel %vm5039_vm15, nan, %v2251_v45  ;;  %v2355_v35 = vsel %vm5041_vm12, nan, %v2354_v33  ;;  %vm1406_vm8 = vcmp.lt.s32.totalorder %v1405_v24, 2  ;;  %v3009_v8 = vmin.u32 %v1481_v57, %v4758_v3  ;;  %v3221_v7 = vpop.eup %3220 }
 0x17c   : > { %2877 = vst [vmem:[%s3730_s29 + $0x68] sm:$0xff] %v2252_v54  ;;  %2878 = vst [vmem:[%s3730_s29 + $0x78] sm:$0xff] %v2355_v35  ;;  %v5042_v6 = vxor.u32 2147483648, %v4429_v32  ;;  %v5043_v43 = vxor.u32 2147483648, %v4424_v50  ;;  %vm1407_vm0 = vcmp.eq.s32.totalorder %v1405_v24, 0  ;;  %v2552_v1 = vand.u32 3, %v5044_v0  ;;  %v3223_v31 = vpop.eup %3222 }
 0x17d   : > { %v2655_v16 = vand.u32 3, %v4567_v9  ;;  %vm1410_vm11 = vcmp.eq.s32.totalorder %v1405_v24, 2  ;;  %v1471_v55 = vadd.s32 %v4683_v10, %v4670_v63  ;;  %v1483_v26 = vclz %v3009_v8 }
 0x17e   : > { %v2453_v59 = vsel %vm2451_vm6, %v4424_v50, %v5042_v6  ;;  %v2456_v52 = vsel %vm2454_vm10, %v5043_v43, %v4429_v32  ;;  %v2758_v62 = vand.u32 3, %v4643_v51  ;;  %v1411_v4 = vxor.u32 2147483648, %v3221_v7 }
 0x17f   : > { %v2457_v48 = vsel %vm2450_vm14, %v2453_v59, %v2456_v52  ;;  %vm5046_vm4 = vweird.f32 %v5045_v34  ;;  %vm2553_vm13 = vcmp.lt.s32.totalorder %v2552_v1, 2  ;;  %vm2554_vm2 = vcmp.eq.s32.totalorder %v2552_v1, 0 }
 0x180   : > { %v2458_v50 = vsel %vm5046_vm4, nan, %v2457_v48  ;;  %v1408_v32 = vxor.u32 2147483648, %v3223_v31  ;;  %v3010_v47 = vadd.s32 4294967294, %v1483_v26  ;;  %v2556_v9 = vsel %vm2554_vm2, %v4546_v42, %v1200_v37 }
 0x181   : > { %2879 = vst [vmem:[%s3730_s29 + $0x88] sm:$0xff] %v2458_v50  ;;  %vm2557_vm9 = vcmp.eq.s32.totalorder %v2552_v1, 2  ;;  %v1412_v56 = vsel %vm1410_vm11, %v1411_v4, %v3223_v31  ;;  %vm2656_vm3 = vcmp.lt.s32.totalorder %v2655_v16, 2  ;;  %vm2657_vm5 = vcmp.eq.s32.totalorder %v2655_v16, 0 }
 0x182   : > { %v2559_v51 = vsel %vm2557_vm9, %v1203_v44, %v4549_v61  ;;  %v1409_v63 = vsel %vm1407_vm0, %v3221_v7, %v1408_v32  ;;  %vm3011_vm15 = vcmp.lt.s32.totalorder %v3010_v47, 0  ;;  %v2659_v20 = vsel %vm2657_vm5, %v4661_v14, %v1304_v13 }
 0x183   : > { %v2560_v10 = vsel %vm2553_vm13, %v2556_v9, %v2559_v51  ;;  %v1413_v37 = vsel %vm1406_vm8, %v1409_v63, %v1412_v56  ;;  %v1486_v53 = vsel %vm3011_vm15, 0, %v3010_v47  ;;  %vm5047_vm12 = vweird.f32 %v4171_v30 }
 0x184   : > { %v2561_v29 = vsel %vm5047_vm12, nan, %v2560_v10  ;;  %vm2660_vm14 = vcmp.eq.s32.totalorder %v2655_v16, 2  ;;  %v1414_v42 = vsel %vm1403_vm1, nan, %v1413_v37  ;;  %v1487_v61 = vsub.s32 32, %v1486_v53 }
 0x185   : > { %v1488_v44 = vshll.u32 %v4758_v3, %v1486_v53  ;;  %v1491_v19 = vsub.s32 4294967266, %v1486_v53  ;;  %2880 = vst [vmem:[%s3730_s29 + $0x98] sm:$0xff] %v2561_v29  ;;  %1530 = vst [vmem:[%s3730_s29 + $0xb0] sm:$0xff] %v1414_v42  ;;  %v2662_v13 = vsel %vm2660_vm14, %v1307_v25, %v4665_v36  ;;  %vm2759_vm6 = vcmp.lt.s32.totalorder %v2758_v62, 2 }
 0x186   : > { %vm2760_vm10 = vcmp.eq.s32.totalorder %v2758_v62, 0  ;;  %vm2763_vm8 = vcmp.eq.s32.totalorder %v2758_v62, 2  ;;  %v1489_v30 = vshrl.u32 %v1471_v55, %v1487_v61  ;;  %v2663_v17 = vsel %vm2656_vm3, %v2659_v20, %v2662_v13 }
 0x187   : > { %v1492_v12 = vadd.s32 127, %v1491_v19  ;;  %v2762_v41 = vsel %vm2760_vm10, %v3221_v7, %v1408_v32  ;;  %v2664_v46 = vsel %vm1299_vm7, nan, %v2663_v17  ;;  %v2765_v24 = vsel %vm2763_vm8, %v1411_v4, %v3223_v31 }
 0x188   : > { %v1490_v3 = vor.u32 %v1489_v30, %v1488_v44  ;;  %2881 = vst [vmem:[%s3730_s29 + $0xa8] sm:$0xff] %v2664_v46  ;;  %v2766_v15 = vsel %vm2759_vm6, %v2762_v41, %v2765_v24  ;;  %v1501_v49 = vsub.s32 4, %v4741_v2  ;;  %vm1417_vm0 = vcmp.lt.s32.totalorder %v4522_v38, 0 }
 0x189   : > { %v1493_v60 = vshll.u32 %v1492_v12, 23  ;;  %v2767_v14 = vsel %vm1403_vm1, nan, %v2766_v15  ;;  %vm1416_vm7 = vcmp.le.f32.partialorder %v1415_v23, 0.7853982  ;;  %vm1507_vm3 = vweird.f32 %v4522_v38 }
 0x18a   : > { %v1497_v25 = vcvt.s32.f32 %v1490_v3  ;;  %2882 = vst [vmem:[%s3730_s29 + $0xb8] sm:$0xff] %v2767_v14  ;;  %v1502_v45 = vsel %vm1417_vm0, %v1501_v49, %v4741_v2 }
 0x18b   : > { %v1494_v36 = vor.u32 4788187, %v1493_v60  ;;  %v1504_v11 = vsel %vm1416_vm7, 0, %v1502_v45 }
 0x18c   : > { %v1508_v27 = vadd.s32 3, %v1504_v11  ;;  %v2861_v57 = vand.u32 3, %v1504_v11 }
 0x18d   : > { %v1495_v5 = vand.u32 2147483647, %v1494_v36 }
 0x18e   : > { %v1509_v18 = vand.u32 3, %v1508_v27  ;;  %vm2866_vm11 = vcmp.eq.s32.totalorder %v2861_v57, 2  ;;  %vm2863_vm13 = vcmp.eq.s32.totalorder %v2861_v57, 0  ;;  %vm2862_vm9 = vcmp.lt.s32.totalorder %v2861_v57, 2 }
 0x18f   : > { %v1498_v58 = vmul.f32 %v1497_v25, %v1495_v5 }
 0x190   : > { %vm1514_vm1 = vcmp.eq.s32.totalorder %v1509_v18, 2  ;;  %vm1511_vm4 = vcmp.eq.s32.totalorder %v1509_v18, 0  ;;  %vm1510_vm2 = vcmp.lt.s32.totalorder %v1509_v18, 2 }
 0x191   : > { %v1499_v22 = vxor.u32 2147483648, %v1498_v58 }
 0x193   : > { %v1500_v28 = vsel %vm1417_vm0, %v1499_v22, %v1498_v58 }
 0x194   : > { %v1503_v21 = vsel %vm1416_vm7, %v4522_v38, %v1500_v28 }
 0x195   : > { %3224 = vcosq.f32 %v1503_v21 }
 0x196   : > { %3226 = vsinq.f32 %v1503_v21 }
 0x19f   : > { %v3225_v39 = vpop.eup %3224 }
 0x1a0   : > { %v3227_v54 = vpop.eup %3226  ;;  %v1515_v23 = vxor.u32 2147483648, %v3225_v39  ;;  %2891 = sbr.rel (!%p3359_p5) target bundleno = 451 (0x1c3), region = 28 }
 0x1a1   : > { %v1512_v2 = vxor.u32 2147483648, %v3227_v54 }
 0x1a2   : > { %v1516_v33 = vsel %vm1514_vm1, %v1515_v23, %v3227_v54  ;;  %v2868_v40 = vsel %vm2866_vm11, %v1515_v23, %v3227_v54 }
 0x1a3   : > { %v1513_v35 = vsel %vm1511_vm4, %v3225_v39, %v1512_v2  ;;  %v2865_v8 = vsel %vm2863_vm13, %v3225_v39, %v1512_v2 }
 0x1a4   : > { %v1517_v6 = vsel %vm1510_vm2, %v1513_v35, %v1516_v33  ;;  %v2869_v59 = vsel %vm2862_vm9, %v2865_v8, %v2868_v40 }
 0x1a5   : > { %v1518_v43 = vsel %vm1507_vm3, nan, %v1517_v6  ;;  %v2870_v52 = vsel %vm1507_vm3, nan, %v2869_v59 }
 0x1a6   : > { %1531 = vst [vmem:[%s3730_s29 + $0xc0] sm:$0xff] %v1518_v43  ;;  %2883 = vst [vmem:[%s3730_s29 + $0xc8] sm:$0xff] %v2870_v52 }
 0x1a7   : > { %s5053_s8 = smov (!%p2894_p10, %s2893_s8), 13 }
 0x1a8   : > { %s4837_s9 = sshll.u32 %s5053_s8, 8 }
 0x1a9   : > { %s2899_s10 = ssub.s32 3328, %s4837_s9 }
 0x1aa   : > { %2900 = vsyncadd %s4832_s6, %s2899_s10  ;;  %p3066_p11 = scmp.ne.s32.totalorder %s4837_s9, 0  ;;  %s3076_s15 = smul.u32 3328, %s3342_s0 }
 0x1ab   : > { %s2906_s17 = sshll.u32 %s3730_s29, 4  ;;  %s3300_s24 = smov [#allocation4]   ;;  %s4849_s17 = int_to_ptr.vmem [resolvable:$true] %s2906_s17 }
 0x1ac   : > { %s4847_s22 = scalar_lea.hbm %s4895_s2, %s3076_s15  ;;  %s3230_s23 = scalar_lea.vmem %s4849_s17, %s4837_s9 }
 0x1ad   : > { %p3231_p12 = scmp.ne.s32.totalorder %s4849_s17, %s3230_s23  ;;  %s3234_s25 = sshll.u32 %s3300_s24, 4  ;;  %s3235_s25 = int_to_ptr.vmem [resolvable:$false] %s3234_s25 }
 0x1ae   : > { %s3236_s0 = scalar_lea.vmem %s3235_s25, 6656  ;;  %p3237_p1 = scmp.lt.s32.totalorder %s4849_s17, %s3235_s25 }
 0x1af   : > { %p3232_p13 = pnand %p3231_p12, %p3066_p11  ;;  %p3238_p2 = scmp.lt.s32.totalorder %s3236_s0, %s3230_s23 }
 0x1b1   : > { %p3233_p0 = pneg %p3232_p13  ;;  %p3239_p3 = por %p3238_p2, %p3237_p1 }
 0x1b3   : > { %p3240_p4 = pnand %p3239_p3, %p3233_p0 }
 0x1b5   : > { %3243 = shalt.err (!%p3240_p4)
}
 0x1b6   : > { %s3244_s26 = scalar_lea.hbm %s4847_s22, %s4837_s9  ;;  %s3248_s29 = scalar_lea.hbm %s4895_s2, 6400 }
 0x1b7   : > { %p3245_p5 = scmp.ne.s32.totalorder %s4847_s22, %s3244_s26  ;;  %p3249_p9 = scmp.lt.u32.totalorder %s4847_s22, %s4895_s2 }
 0x1b8   : > { %p3250_p10 = scmp.lt.u32.totalorder %s3248_s29, %s3244_s26  ;;  %p3252_p13 = scmp.lt.u32.totalorder %s3244_s26, %s4847_s22 }
 0x1b9   : > { %p3246_p7 = pnand %p3245_p5, %p3066_p11 }
 0x1ba   : > { %p3251_p12 = por %p3250_p10, %p3249_p9 }
 0x1bb   : > { %p3247_p8 = pneg %p3246_p7 }
 0x1bc   : > { %p3253_p0 = por %p3252_p13, %p3251_p12 }
 0x1be   : > { %p3254_p1 = pnand %p3253_p0, %p3247_p8 }
 0x1c0   : > { %3257 = shalt.err (!%p3254_p1)
}
 0x1c1   : > { %s3301_s4 = smov 256   ;;  %s3302_s5 = smov 16  }
 0x1c2   : > { %2912 = dma.vmem_to_hbm [thread:$0]  (%p3066_p11), %s4849_s17, %s4837_s9, %s4847_s22, %s4832_s6, %s3301_s4, %s3301_s4, %s3302_s5  }
 0x1c3 PF: > { %p3135_p2 = scmp.ge.s32.totalorder %s3292_s14, 2  ;;  %s2921_s7 = sand.u32 1, %s3280_s11  }
 0x1c4   : > { %s2922_s8 = scalar_lea.sflag [#allocation5], %s2921_s7 }
 0x1c5   : > { %p3132_p3 = pnand %p3135_p2, %p3363_p6 }
 0x1c7   : > { %3275 = dma.done.wait (!%p3132_p3), %s2922_s8, 3328  }
 0x1c8   : > { %3277 = vsyncadd (!%p3132_p3), %s2922_s8, 4294963968  ;;  %p13_p4 = scmp.ge.s32.totalorder %s3346_s16, 4   ;;  %s5048_s11 = smov %s3284_s12 }
 0x1c9   : > { %s5049_s12 = smov %s3288_s13  ;;  %s5050_s13 = smov %s3357_s19 }
 0x1ca   : > { %s5051_s14 = smov %s3346_s16  ;;  %15 = sbr.rel (!%p13_p4) target bundleno = 5 (0x5), region = 56 }
 0x1d1   :  { %2927 = vsyncpa [#allocation5], 1 }
 0x1d2   :  { %2929 = vsyncpa [#allocation5 + $0x1], 1 }

</bundles_post_ra>
